<compile_context>
chip_gen: v5e
topology: v5e:2x2
jax: 0.10.0
libtpu: 0.0.40
codegen_flags: <defaults>
</compile_context>

<pallas_src>
import functools

import jax
import jax.numpy as jnp
from jax.experimental import pallas as pl
from jax.experimental.pallas import tpu as pltpu


# ----------------------------------------------------------------------------
# Kernel
# ----------------------------------------------------------------------------
def vae_kernel(x_ref, eps_ref, w_ref, b_ref,
               recon_ref, mu_ref, logvar_ref,
               *, latent_dim, block_rows):
    """Fused VAE forward on one batch tile (batch-major: batch on sublanes).

    x_ref      : (tb, D)               input features (caller layout)
    eps_ref    : (tb, L)               N(0,1) noise
    w_ref      : (6*block_rows, width) packed W^T slab; layer k occupies the
                                       sublane-aligned block
                                       rows [k*block_rows, (k+1)*block_rows)
    b_ref      : (8, width)            packed bias slab; layer k at row k
    recon_ref  : (tb, D)
    mu_ref     : (tb, L)
    logvar_ref : (tb, L)
    """
    L = latent_dim
    D = recon_ref.shape[-1]

    def layer(act, k):
        # act is (tb, in_f); weight block is W^T zero-padded to (width, width),
        # so dotting against its first in_f rows (8-aligned sublane slice,
        # never a lane slice) gives act @ W.T.  Zero-padded output columns stay
        # exactly zero (zero weight cols + zero bias), so they can flow through
        # ReLU and the next layer's zero rows unchanged.
        in_f = act.shape[-1]
        w = w_ref[block_rows * k:block_rows * k + in_f, :]
        b = b_ref[k:k + 1, :]
        return jnp.dot(act, w, preferred_element_type=jnp.float32) + b

    # ---- encoder: Linear(D,16)+ReLU, Linear(16,8)+ReLU ----
    h = jnp.maximum(layer(x_ref[...], 0), 0.0)        # (tb, width)
    h = jnp.maximum(layer(h, 1), 0.0)                 # (tb, width) cols>=8 are 0

    # ---- fused latent heads: one (8 -> 2L) matmul, split lanes ----
    ml = layer(h, 2)                                  # (tb, width) = [mu | logvar]
    mu = ml[:, :L]                                    # (tb, L)
    logvar = ml[:, L:2 * L]                           # (tb, L)

    # ---- reparameterize: z = mu + eps * exp(0.5 * logvar) ----
    z = mu + eps_ref[...] * jnp.exp(0.5 * logvar)     # (tb, L)

    # ---- decoder: Linear(L,8)+ReLU, Linear(8,16)+ReLU, Linear(16,D)+Sigmoid ----
    d = jnp.maximum(layer(z, 3), 0.0)                 # (tb, width)
    d = jnp.maximum(layer(d, 4), 0.0)                 # (tb, width)
    recon = jax.nn.sigmoid(layer(d, 5))               # (tb, width)

    # outputs already in caller layout -> no wrapper transposes needed
    recon_ref[...] = recon[:, :D].astype(recon_ref.dtype)
    mu_ref[...] = mu.astype(mu_ref.dtype)
    logvar_ref[...] = logvar.astype(logvar_ref.dtype)


# ----------------------------------------------------------------------------
# Parameter handling
# ----------------------------------------------------------------------------
def init_params(key, input_dim, latent_dim):
    """Deterministic synthetic weights, torch convention: W is (out, in)."""
    dims = [
        (input_dim, 16),   # encoder Linear 0
        (16, 8),           # encoder Linear 2
        (8, latent_dim),   # fc_mu
        (8, latent_dim),   # fc_logvar
        (latent_dim, 8),   # decoder Linear 0
        (8, 16),           # decoder Linear 2
        (16, input_dim),   # decoder Linear 4
    ]
    params = []
    for fan_in, fan_out in dims:
        key, kw, kb = jax.random.split(key, 3)
        bound = 1.0 / jnp.sqrt(fan_in)
        w = jax.random.uniform(kw, (fan_out, fan_in), jnp.float32, -bound, bound)
        b = jax.random.uniform(kb, (fan_out,), jnp.float32, -bound, bound)
        params.append((w, b))
    return params


def pack_params(params, latent_dim):
    """Fuse mu/logvar heads and pack weights/biases into two small slabs.

    Returns:
      w_slab : (6*width, width)  layer k = W_k^T zero-padded to (width, width)
                                 at rows [k*width, (k+1)*width)
      b_slab : (8, width)        layer k bias (zero-padded) at row k
      width  : common feature width (multiple of 8, >= every in/out dim)
      shapes : true (out, in) per fused layer (for the cost estimate)
    """
    (w1, b1), (w2, b2), (wmu, bmu), (wlv, blv), \
        (wd1, bd1), (wd2, bd2), (wd3, bd3) = params

    # fuse the two latent heads (same LHS): one (2L, 8) matmul
    w_heads = jnp.concatenate([wmu, wlv], axis=0)
    b_heads = jnp.concatenate([bmu, blv], axis=0)

    layers = [(w1, b1), (w2, b2), (w_heads, b_heads),
              (wd1, bd1), (wd2, bd2), (wd3, bd3)]

    width = max(max(int(w.shape[0]), int(w.shape[1])) for w, _ in layers)
    width = -(-width // 8) * 8                      # sublane-align block height

    w_blocks, b_rows, shapes = [], [], []
    for w, b in layers:
        out_f, in_f = int(w.shape[0]), int(w.shape[1])
        blk = jnp.zeros((width, width), jnp.float32).at[:in_f, :out_f].set(w.T)
        w_blocks.append(blk)
        b_rows.append(jnp.zeros((1, width), jnp.float32).at[0, :out_f].set(b))
        shapes.append((out_f, in_f))

    w_slab = jnp.concatenate(w_blocks, axis=0)                  # (6*width, width)
    b_slab = jnp.concatenate(
        b_rows + [jnp.zeros((8 - len(b_rows), width), jnp.float32)], axis=0)
    return w_slab, b_slab, width, tuple(shapes)


# ----------------------------------------------------------------------------
# Wrapper
# ----------------------------------------------------------------------------
def _default_batch_tile(batch):
    """Single maximal block on single-core chips (v5e/v6e); split the batch
    across the two TensorCores on dual-core (v7x-like) chips."""
    try:
        kind = jax.devices()[0].device_kind.lower()
    except Exception:
        kind = ""
    dual_core = ("v7" in kind) or ("7x" in kind)
    if dual_core and batch >= 256 and (batch // 2) % 8 == 0:
        return batch // 2
    return batch


def vae_forward(x, eps, params, tb=None):
    """Fused VAE forward.  x: (B, D), eps: (B, L) -> (recon, mu, logvar)."""
    B, D = x.shape
    L = eps.shape[1]

    w_slab, b_slab, width, shapes = pack_params(params, L)
    R = w_slab.shape[0]

    # pad the batch (sublane axis) to a multiple of 8 only if needed
    pad = (-B) % 8
    if pad:
        x = jnp.pad(x, ((0, pad), (0, 0)))
        eps = jnp.pad(eps, ((0, pad), (0, 0)))
    Bp = B + pad

    if tb is None:
        tb = _default_batch_tile(Bp)
    if Bp % tb != 0 or tb % 8 != 0:
        tb = Bp
    grid = (Bp // tb,)

    kernel = functools.partial(vae_kernel, latent_dim=L, block_rows=width)

    flops = 2 * Bp * sum(o * i for o, i in shapes)
    transcendentals = Bp * (L + D)                       # exp + sigmoid
    bytes_accessed = 4 * (x.size + eps.size + w_slab.size + b_slab.size
                          + Bp * D + 2 * Bp * L)

    recon, mu, logvar = pl.pallas_call(
        kernel,
        grid=grid,
        in_specs=[
            pl.BlockSpec((tb, D), lambda i: (i, 0)),      # x   (caller layout)
            pl.BlockSpec((tb, L), lambda i: (i, 0)),      # eps (caller layout)
            pl.BlockSpec((R, width), lambda i: (0, 0)),   # packed W^T slab
            pl.BlockSpec((8, width), lambda i: (0, 0)),   # packed bias slab
        ],
        out_specs=(
            pl.BlockSpec((tb, D), lambda i: (i, 0)),
            pl.BlockSpec((tb, L), lambda i: (i, 0)),
            pl.BlockSpec((tb, L), lambda i: (i, 0)),
        ),
        out_shape=(
            jax.ShapeDtypeStruct((Bp, D), jnp.float32),   # reconstructed_x
            jax.ShapeDtypeStruct((Bp, L), jnp.float32),   # mu
            jax.ShapeDtypeStruct((Bp, L), jnp.float32),   # logvar
        ),
        compiler_params=pltpu.CompilerParams(
            dimension_semantics=("parallel",)),
        cost_estimate=pl.CostEstimate(
            flops=flops,
            transcendentals=transcendentals,
            bytes_accessed=bytes_accessed),
    )(x, eps, w_slab, b_slab)

    if pad:
        recon, mu, logvar = recon[:B], mu[:B], logvar[:B]
    return recon, mu, logvar


# ----------------------------------------------------------------------------
# Pure-JAX reference (torch semantics)
# ----------------------------------------------------------------------------
def vae_reference(x, eps, params):
    (w1, b1), (w2, b2), (wmu, bmu), (wlv, blv), \
        (wd1, bd1), (wd2, bd2), (wd3, bd3) = params
    h = jnp.maximum(x @ w1.T + b1, 0.0)
    h = jnp.maximum(h @ w2.T + b2, 0.0)
    mu = h @ wmu.T + bmu
    logvar = h @ wlv.T + blv
    z = mu + eps * jnp.exp(0.5 * logvar)
    d = jnp.maximum(z @ wd1.T + bd1, 0.0)
    d = jnp.maximum(d @ wd2.T + bd2, 0.0)
    recon = jax.nn.sigmoid(d @ wd3.T + bd3)
    return recon, mu, logvar


# ----------------------------------------------------------------------------
if __name__ == "__main__":
    input_dim = 16
    latent_dim = 8
    batch = 256

    key = jax.random.PRNGKey(0)
    key, kx, keps, kp = jax.random.split(key, 4)

    # MinMaxScaler-style inputs in [0, 1]
    x = jax.random.uniform(kx, (batch, input_dim), jnp.float32, 0.0, 1.0)
    # TODO(synk): epsilon comes from JAX PRNG, not torch's RNG stream.
    eps = jax.random.normal(keps, (batch, latent_dim), jnp.float32)

    params = init_params(kp, input_dim, latent_dim)

    recon, mu, logvar = vae_forward(x, eps, params)
    jax.block_until_ready((recon, mu, logvar))

    # sanity check against pure-JAX reference
    r_ref, mu_ref, lv_ref = vae_reference(x, eps, params)
    assert jnp.allclose(recon, r_ref, atol=2e-5), "recon mismatch"
    assert jnp.allclose(mu, mu_ref, atol=2e-5), "mu mismatch"
    assert jnp.allclose(logvar, lv_ref, atol=2e-5), "logvar mismatch"

    print("KERNEL_OK")
</pallas_src>

<mosaic_0001>
module attributes {stable_mosaic.version = 11 : i64} {
  func.func @vae_kernel(%arg0: i32, %arg1: memref<256x16xf32, #tpu.memory_space<vmem>>, %arg2: memref<256x8xf32, #tpu.memory_space<vmem>>, %arg3: memref<96x16xf32, #tpu.memory_space<vmem>>, %arg4: memref<8x16xf32, #tpu.memory_space<vmem>>, %arg5: memref<256x16xf32, #tpu.memory_space<vmem>>, %arg6: memref<256x8xf32, #tpu.memory_space<vmem>>, %arg7: memref<256x8xf32, #tpu.memory_space<vmem>>) attributes {dimension_semantics = [#tpu.dimension_semantics<parallel>], iteration_bounds = array<i64: 1>, scalar_prefetch = 0 : i64, scratch_operands = 0 : i64, tpu.core_type = #tpu.core_type<tc>, window_params = [{transform_indices = @transform_0, window_bounds = array<i64: 256, 16>}, {transform_indices = @transform_1, window_bounds = array<i64: 256, 8>}, {pipeline_mode = #tpu.pipeline_mode<synchronous>, transform_indices = @transform_2, window_bounds = array<i64: 96, 16>}, {pipeline_mode = #tpu.pipeline_mode<synchronous>, transform_indices = @transform_3, window_bounds = array<i64: 8, 16>}, {transform_indices = @transform_4, window_bounds = array<i64: 256, 16>}, {transform_indices = @transform_5, window_bounds = array<i64: 256, 8>}, {transform_indices = @transform_6, window_bounds = array<i64: 256, 8>}]} {
    %c0 = arith.constant 0 : index
    %c0_0 = arith.constant 0 : index
    %0 = vector.load %arg1[%c0, %c0_0] : memref<256x16xf32, #tpu.memory_space<vmem>>, vector<256x16xf32>
    %c0_1 = arith.constant 0 : index
    %c0_2 = arith.constant 0 : index
    %1 = vector.load %arg3[%c0_1, %c0_2] : memref<96x16xf32, #tpu.memory_space<vmem>>, vector<16x16xf32>
    %c0_3 = arith.constant 0 : index
    %c0_4 = arith.constant 0 : index
    %2 = vector.load %arg4[%c0_3, %c0_4] : memref<8x16xf32, #tpu.memory_space<vmem>>, vector<1x16xf32>
    %cst = arith.constant dense<0.000000e+00> : vector<256x16xf32>
    %3 = tpu.matmul %0, %1, %cst {dimension_numbers = #tpu.dot_dimension_numbers<[1], [0], [0], [1], [0, 0, 1, 1], [], []>} : vector<256x16xf32>, vector<16x16xf32>, vector<256x16xf32> -> vector<256x16xf32>
    %4 = vector.broadcast %2 : vector<1x16xf32> to vector<256x16xf32>
    %5 = arith.addf %3, %4 : vector<256x16xf32>
    %cst_5 = arith.constant 0.000000e+00 : f32
    %6 = vector.broadcast %cst_5 : f32 to vector<256x16xf32>
    %7 = arith.maximumf %5, %6 : vector<256x16xf32>
    %c16 = arith.constant 16 : index
    %c0_6 = arith.constant 0 : index
    %8 = vector.load %arg3[%c16, %c0_6] : memref<96x16xf32, #tpu.memory_space<vmem>>, vector<16x16xf32>
    %c1 = arith.constant 1 : index
    %c0_7 = arith.constant 0 : index
    %9 = vector.load %arg4[%c1, %c0_7] : memref<8x16xf32, #tpu.memory_space<vmem>>, vector<1x16xf32>
    %cst_8 = arith.constant dense<0.000000e+00> : vector<256x16xf32>
    %10 = tpu.matmul %7, %8, %cst_8 {dimension_numbers = #tpu.dot_dimension_numbers<[1], [0], [0], [1], [0, 0, 1, 1], [], []>} : vector<256x16xf32>, vector<16x16xf32>, vector<256x16xf32> -> vector<256x16xf32>
    %11 = vector.broadcast %9 : vector<1x16xf32> to vector<256x16xf32>
    %12 = arith.addf %10, %11 : vector<256x16xf32>
    %cst_9 = arith.constant 0.000000e+00 : f32
    %13 = vector.broadcast %cst_9 : f32 to vector<256x16xf32>
    %14 = arith.maximumf %12, %13 : vector<256x16xf32>
    %c32 = arith.constant 32 : index
    %c0_10 = arith.constant 0 : index
    %15 = vector.load %arg3[%c32, %c0_10] : memref<96x16xf32, #tpu.memory_space<vmem>>, vector<16x16xf32>
    %c2 = arith.constant 2 : index
    %c0_11 = arith.constant 0 : index
    %16 = vector.load %arg4[%c2, %c0_11] : memref<8x16xf32, #tpu.memory_space<vmem>>, vector<1x16xf32>
    %cst_12 = arith.constant dense<0.000000e+00> : vector<256x16xf32>
    %17 = tpu.matmul %14, %15, %cst_12 {dimension_numbers = #tpu.dot_dimension_numbers<[1], [0], [0], [1], [0, 0, 1, 1], [], []>} : vector<256x16xf32>, vector<16x16xf32>, vector<256x16xf32> -> vector<256x16xf32>
    %18 = vector.broadcast %16 : vector<1x16xf32> to vector<256x16xf32>
    %19 = arith.addf %17, %18 : vector<256x16xf32>
    %20 = vector.extract_strided_slice %19 {offsets = [0, 0], sizes = [256, 8], strides = [1, 1]} : vector<256x16xf32> to vector<256x8xf32>
    %21 = vector.extract_strided_slice %19 {offsets = [0, 8], sizes = [256, 8], strides = [1, 1]} : vector<256x16xf32> to vector<256x8xf32>
    %c0_13 = arith.constant 0 : index
    %c0_14 = arith.constant 0 : index
    %22 = vector.load %arg2[%c0_13, %c0_14] : memref<256x8xf32, #tpu.memory_space<vmem>>, vector<256x8xf32>
    %cst_15 = arith.constant 5.000000e-01 : f32
    %23 = vector.broadcast %cst_15 : f32 to vector<256x8xf32>
    %24 = arith.mulf %23, %21 : vector<256x8xf32>
    %25 = math.exp %24 : vector<256x8xf32>
    %26 = arith.mulf %22, %25 : vector<256x8xf32>
    %27 = arith.addf %20, %26 : vector<256x8xf32>
    %c48 = arith.constant 48 : index
    %c0_16 = arith.constant 0 : index
    %28 = vector.load %arg3[%c48, %c0_16] : memref<96x16xf32, #tpu.memory_space<vmem>>, vector<8x16xf32>
    %c3 = arith.constant 3 : index
    %c0_17 = arith.constant 0 : index
    %29 = vector.load %arg4[%c3, %c0_17] : memref<8x16xf32, #tpu.memory_space<vmem>>, vector<1x16xf32>
    %cst_18 = arith.constant dense<0.000000e+00> : vector<256x16xf32>
    %30 = tpu.matmul %27, %28, %cst_18 {dimension_numbers = #tpu.dot_dimension_numbers<[1], [0], [0], [1], [0, 0, 1, 1], [], []>} : vector<256x8xf32>, vector<8x16xf32>, vector<256x16xf32> -> vector<256x16xf32>
    %31 = vector.broadcast %29 : vector<1x16xf32> to vector<256x16xf32>
    %32 = arith.addf %30, %31 : vector<256x16xf32>
    %cst_19 = arith.constant 0.000000e+00 : f32
    %33 = vector.broadcast %cst_19 : f32 to vector<256x16xf32>
    %34 = arith.maximumf %32, %33 : vector<256x16xf32>
    %c64 = arith.constant 64 : index
    %c0_20 = arith.constant 0 : index
    %35 = vector.load %arg3[%c64, %c0_20] : memref<96x16xf32, #tpu.memory_space<vmem>>, vector<16x16xf32>
    %c4 = arith.constant 4 : index
    %c0_21 = arith.constant 0 : index
    %36 = vector.load %arg4[%c4, %c0_21] : memref<8x16xf32, #tpu.memory_space<vmem>>, vector<1x16xf32>
    %cst_22 = arith.constant dense<0.000000e+00> : vector<256x16xf32>
    %37 = tpu.matmul %34, %35, %cst_22 {dimension_numbers = #tpu.dot_dimension_numbers<[1], [0], [0], [1], [0, 0, 1, 1], [], []>} : vector<256x16xf32>, vector<16x16xf32>, vector<256x16xf32> -> vector<256x16xf32>
    %38 = vector.broadcast %36 : vector<1x16xf32> to vector<256x16xf32>
    %39 = arith.addf %37, %38 : vector<256x16xf32>
    %cst_23 = arith.constant 0.000000e+00 : f32
    %40 = vector.broadcast %cst_23 : f32 to vector<256x16xf32>
    %41 = arith.maximumf %39, %40 : vector<256x16xf32>
    %c80 = arith.constant 80 : index
    %c0_24 = arith.constant 0 : index
    %42 = vector.load %arg3[%c80, %c0_24] : memref<96x16xf32, #tpu.memory_space<vmem>>, vector<16x16xf32>
    %c5 = arith.constant 5 : index
    %c0_25 = arith.constant 0 : index
    %43 = vector.load %arg4[%c5, %c0_25] : memref<8x16xf32, #tpu.memory_space<vmem>>, vector<1x16xf32>
    %cst_26 = arith.constant dense<0.000000e+00> : vector<256x16xf32>
    %44 = tpu.matmul %41, %42, %cst_26 {dimension_numbers = #tpu.dot_dimension_numbers<[1], [0], [0], [1], [0, 0, 1, 1], [], []>} : vector<256x16xf32>, vector<16x16xf32>, vector<256x16xf32> -> vector<256x16xf32>
    %45 = vector.broadcast %43 : vector<1x16xf32> to vector<256x16xf32>
    %46 = arith.addf %44, %45 : vector<256x16xf32>
    %47 = arith.negf %46 : vector<256x16xf32>
    %48 = math.exp %47 : vector<256x16xf32>
    %cst_27 = arith.constant 1.000000e+00 : f32
    %49 = vector.broadcast %cst_27 : f32 to vector<256x16xf32>
    %50 = arith.addf %49, %48 : vector<256x16xf32>
    %51 = arith.divf %49, %50 : vector<256x16xf32>
    %c0_28 = arith.constant 0 : index
    %c0_29 = arith.constant 0 : index
    %52 = vector.load %arg5[%c0_28, %c0_29] : memref<256x16xf32, #tpu.memory_space<vmem>>, vector<256x16xf32>
    tpu.vector_store %arg5[%c0_28, %c0_29], %51 {strides = array<i32>} : memref<256x16xf32, #tpu.memory_space<vmem>>, vector<256x16xf32>,
    %c0_30 = arith.constant 0 : index
    %c0_31 = arith.constant 0 : index
    %53 = vector.load %arg6[%c0_30, %c0_31] : memref<256x8xf32, #tpu.memory_space<vmem>>, vector<256x8xf32>
    tpu.vector_store %arg6[%c0_30, %c0_31], %20 {strides = array<i32>} : memref<256x8xf32, #tpu.memory_space<vmem>>, vector<256x8xf32>,
    %c0_32 = arith.constant 0 : index
    %c0_33 = arith.constant 0 : index
    %54 = vector.load %arg7[%c0_32, %c0_33] : memref<256x8xf32, #tpu.memory_space<vmem>>, vector<256x8xf32>
    tpu.vector_store %arg7[%c0_32, %c0_33], %21 {strides = array<i32>} : memref<256x8xf32, #tpu.memory_space<vmem>>, vector<256x8xf32>,
    return
  }
  func.func @transform_0(%arg0: i32) -> (i32, i32) {
    %c0_i32 = arith.constant 0 : i32
    %c0_i32_0 = arith.constant 0 : i32
    return %arg0, %c0_i32 : i32, i32
  }
  func.func @transform_1(%arg0: i32) -> (i32, i32) {
    %c0_i32 = arith.constant 0 : i32
    %c0_i32_0 = arith.constant 0 : i32
    return %arg0, %c0_i32 : i32, i32
  }
  func.func @transform_2(%arg0: i32) -> (i32, i32) {
    %c0_i32 = arith.constant 0 : i32
    %c0_i32_0 = arith.constant 0 : i32
    %c0_i32_1 = arith.constant 0 : i32
    return %c0_i32, %c0_i32_0 : i32, i32
  }
  func.func @transform_3(%arg0: i32) -> (i32, i32) {
    %c0_i32 = arith.constant 0 : i32
    %c0_i32_0 = arith.constant 0 : i32
    %c0_i32_1 = arith.constant 0 : i32
    return %c0_i32, %c0_i32_0 : i32, i32
  }
  func.func @transform_4(%arg0: i32) -> (i32, i32) {
    %c0_i32 = arith.constant 0 : i32
    %c0_i32_0 = arith.constant 0 : i32
    return %arg0, %c0_i32 : i32, i32
  }
  func.func @transform_5(%arg0: i32) -> (i32, i32) {
    %c0_i32 = arith.constant 0 : i32
    %c0_i32_0 = arith.constant 0 : i32
    return %arg0, %c0_i32 : i32, i32
  }
  func.func @transform_6(%arg0: i32) -> (i32, i32) {
    %c0_i32 = arith.constant 0 : i32
    %c0_i32_0 = arith.constant 0 : i32
    return %arg0, %c0_i32 : i32, i32
  }
}

</mosaic_0001>

<bundles_post_ra>
// kernel: tpu_custom_call.1
= control target key start
LH: loop header
LB: loop body
LE: loop exit
PB: predicated region body
PF: predicated region fallthrough
CT: control target
= control target key end

     0   :  { %vm56_vm0 = vcmask 130048   ;;  %vm1079_vm1 = vcmask 64512   ;;  %s3050_s12 = smov 120   ;;  %s4469_s2 = inlined_call_operand.vmem [shape: f32[96,16], index: 2, kind: input, shape index: {}]   ;;  %s4470_s0 = inlined_call_operand.vmem [shape: f32[256,16], index: 0, kind: input, shape index: {}]   ;;  %s4471_s3 = inlined_call_operand.vmem [shape: f32[8,16], index: 3, kind: input, shape index: {}]   ;;  %s4472_s5 = inlined_call_operand.vmem [shape: f32[256,8], index: 5, kind: output, shape index: {1}]   ;;  %s4473_s1 = inlined_call_operand.vmem [shape: f32[256,8], index: 1, kind: input, shape index: {}]   ;;  %s4474_s6 = inlined_call_operand.vmem [shape: f32[256,8], index: 6, kind: output, shape index: {2}]   ;;  %s4475_s4 = inlined_call_operand.vmem [shape: f32[256,16], index: 4, kind: output, shape index: {0}]  }
   0x1   :  { %v53_v0 = vld [vmem:[%s4469_s2 + $0x8] sm:$0xff]  ;;  %v52_v1 = vld [vmem:[%s4469_s2] sm:$0xff]  ;;  %v299_v4 = vld [vmem:[%s4469_s2 + $0x18] sm:$0xff] }
   0x2   :  { %167 = vmatpush.msra.mxu0 %v53_v0  ;;  %2847 = vmatpush.msra.mxu1 %v53_v0  ;;  %v20_v2 = vld [vmem:[%s4470_s0] sm:$0xff]  ;;  %v21_v5 = vld [vmem:[%s4470_s0 + $0x8] sm:$0xff]  ;;  %v22_v7 = vld [vmem:[%s4470_s0 + $0x10] sm:$0xff] }
   0x3   :  { %v36_v3 = vld [vmem:[%s4470_s0 + $0x80] sm:$0xff]  ;;  %v37_v6 = vld [vmem:[%s4470_s0 + $0x88] sm:$0xff]  ;;  %v38_v8 = vld [vmem:[%s4470_s0 + $0x90] sm:$0xff] }
   0x4   :  { %168 = vmatpush.msra.mxu0 %v52_v1  ;;  %2848 = vmatpush.msra.mxu1 %v52_v1  ;;  %v23_v9 = vld [vmem:[%s4470_s0 + $0x18] sm:$0xff]  ;;  %v24_v11 = vld [vmem:[%s4470_s0 + $0x20] sm:$0xff]  ;;  %v298_v13 = vld [vmem:[%s4469_s2 + $0x10] sm:$0xff] }
   0x5   :  { %2623 = vmatmul.msk.f32.vlgmr.msra.gmra.mxu0 %vm56_vm0, %v20_v2  ;;  %2639 = vmatmul.msk.f32.vlgmr.msra.gmra.mxu1 %vm56_vm0, %v36_v3  ;;  %v39_v10 = vld [vmem:[%s4470_s0 + $0x98] sm:$0xff]  ;;  %v40_v12 = vld [vmem:[%s4470_s0 + $0xa0] sm:$0xff]  ;;  %v25_v14 = vld [vmem:[%s4470_s0 + $0x28] sm:$0xff] }
   0x6   :  { %412 = vmatpush.msrb.mxu1 %v299_v4  ;;  %v41_v15 = vld [vmem:[%s4470_s0 + $0xa8] sm:$0xff]  ;;  %v26_v16 = vld [vmem:[%s4470_s0 + $0x30] sm:$0xff]  ;;  %v27_v18 = vld [vmem:[%s4470_s0 + $0x38] sm:$0xff] }
   0x7   :  { %v42_v17 = vld [vmem:[%s4470_s0 + $0xb0] sm:$0xff]  ;;  %v43_v19 = vld [vmem:[%s4470_s0 + $0xb8] sm:$0xff]  ;;  %v28_v20 = vld [vmem:[%s4470_s0 + $0x40] sm:$0xff] }
   0x8   :  { %413 = vmatpush.msrb.mxu1 %v298_v13  ;;  %v44_v21 = vld [vmem:[%s4470_s0 + $0xc0] sm:$0xff]  ;;  %v29_v22 = vld [vmem:[%s4470_s0 + $0x48] sm:$0xff]  ;;  %v30_v24 = vld [vmem:[%s4470_s0 + $0x50] sm:$0xff] }
   0x9   :  { %v45_v23 = vld [vmem:[%s4470_s0 + $0xc8] sm:$0xff]  ;;  %v46_v25 = vld [vmem:[%s4470_s0 + $0xd0] sm:$0xff]  ;;  %v31_v26 = vld [vmem:[%s4470_s0 + $0x58] sm:$0xff] }
   0xa   :  { %v47_v27 = vld [vmem:[%s4470_s0 + $0xd8] sm:$0xff]  ;;  %v32_v28 = vld [vmem:[%s4470_s0 + $0x60] sm:$0xff]  ;;  %v33_v30 = vld [vmem:[%s4470_s0 + $0x68] sm:$0xff] }
   0xb   :  { %v48_v29 = vld [vmem:[%s4470_s0 + $0xe0] sm:$0xff]  ;;  %v49_v31 = vld [vmem:[%s4470_s0 + $0xe8] sm:$0xff]  ;;  %v34_v32 = vld [vmem:[%s4470_s0 + $0x70] sm:$0xff] }
   0xc   :  { %v50_v33 = vld [vmem:[%s4470_s0 + $0xf0] sm:$0xff]  ;;  %v35_v34 = vld [vmem:[%s4470_s0 + $0x78] sm:$0xff]  ;;  %v3229_v36 = vld [vmem:[%s4471_s3] ss:$0 sm:$0xff] }
   0xd   :  { %2624 = vmatmul.msk.f32.gmra.mxu0 %vm56_vm0, %v21_v5  ;;  %2640 = vmatmul.msk.f32.gmra.mxu1 %vm56_vm0, %v37_v6  ;;  %v51_v35 = vld [vmem:[%s4470_s0 + $0xf8] sm:$0xff] }
  0x15   :  { %2625 = vmatmul.msk.f32.gmra.mxu0 %vm56_vm0, %v22_v7  ;;  %2641 = vmatmul.msk.f32.gmra.mxu1 %vm56_vm0, %v38_v8 }
  0x1d   :  { %2626 = vmatmul.msk.f32.gmra.mxu0 %vm56_vm0, %v23_v9  ;;  %2642 = vmatmul.msk.f32.gmra.mxu1 %vm56_vm0, %v39_v10 }
  0x25   :  { %2627 = vmatmul.msk.f32.gmra.mxu0 %vm56_vm0, %v24_v11  ;;  %2643 = vmatmul.msk.f32.gmra.mxu1 %vm56_vm0, %v40_v12 }
  0x2d   :  { %2628 = vmatmul.msk.f32.gmra.mxu0 %vm56_vm0, %v25_v14  ;;  %2644 = vmatmul.msk.f32.gmra.mxu1 %vm56_vm0, %v41_v15 }
  0x35   :  { %2629 = vmatmul.msk.f32.gmra.mxu0 %vm56_vm0, %v26_v16  ;;  %2645 = vmatmul.msk.f32.gmra.mxu1 %vm56_vm0, %v42_v17 }
  0x3d   :  { %2630 = vmatmul.msk.f32.gmra.mxu0 %vm56_vm0, %v27_v18  ;;  %2646 = vmatmul.msk.f32.gmra.mxu1 %vm56_vm0, %v43_v19 }
  0x45   :  { %2631 = vmatmul.msk.f32.gmra.mxu0 %vm56_vm0, %v28_v20  ;;  %2647 = vmatmul.msk.f32.gmra.mxu1 %vm56_vm0, %v44_v21 }
  0x4d   :  { %2632 = vmatmul.msk.f32.gmra.mxu0 %vm56_vm0, %v29_v22  ;;  %2648 = vmatmul.msk.f32.gmra.mxu1 %vm56_vm0, %v45_v23 }
  0x55   :  { %2633 = vmatmul.msk.f32.gmra.mxu0 %vm56_vm0, %v30_v24  ;;  %2649 = vmatmul.msk.f32.gmra.mxu1 %vm56_vm0, %v46_v25  ;;  %v544_v25 = vld [vmem:[%s4469_s2 + $0x28] sm:$0xff] }
  0x56   :  { %657 = vmatpush.msra.mxu2 %v544_v25 }
  0x5d   :  { %2634 = vmatmul.msk.f32.gmra.mxu0 %vm56_vm0, %v31_v26  ;;  %2650 = vmatmul.msk.f32.gmra.mxu1 %vm56_vm0, %v47_v27  ;;  %v543_v26 = vld [vmem:[%s4469_s2 + $0x20] sm:$0xff] }
  0x5e   :  { %658 = vmatpush.msra.mxu2 %v543_v26 }
  0x65   :  { %2635 = vmatmul.msk.f32.gmra.mxu0 %vm56_vm0, %v32_v28  ;;  %2651 = vmatmul.msk.f32.gmra.mxu1 %vm56_vm0, %v48_v29 }
  0x6d   :  { %2636 = vmatmul.msk.f32.gmra.mxu0 %vm56_vm0, %v33_v30  ;;  %2652 = vmatmul.msk.f32.gmra.mxu1 %vm56_vm0, %v49_v31 }
  0x75   :  { %2637 = vmatmul.msk.f32.gmra.mxu0 %vm56_vm0, %v34_v32  ;;  %2653 = vmatmul.msk.f32.gmra.mxu1 %vm56_vm0, %v50_v33 }
  0x7d   :  { %2638 = vmatmul.msk.f32.gmra.mxu0 %vm56_vm0, %v35_v34  ;;  %2654 = vmatmul.msk.f32.gmra.mxu1 %vm56_vm0, %v51_v35 }
  0x82   :  { %v170_v37 = vpop.f32.mrf.mxu0  ;;  %v3231_v38 = vpop.f32.mrf.mxu1 }
  0x83   :  { %v171_v39 = vadd.f32 %v3229_v36, %v170_v37 }
  0x85   :  { %v266_v40 = vmax.f32 %v171_v39, 0.0 }
  0x87   :  { %2655 = vmatmul.msk.f32.vlgmr.msrb.gmra.mxu1 %vm56_vm0, %v266_v40 }
  0x8a   :  { %v173_v41 = vpop.f32.mrf.mxu0  ;;  %v3235_v42 = vpop.f32.mrf.mxu1 }
  0x8b   :  { %v174_v43 = vadd.f32 %v3229_v36, %v173_v41  ;;  %v219_v41 = vadd.f32 %v3229_v36, %v3231_v38 }
  0x8d   :  { %v267_v44 = vmax.f32 %v174_v43, 0.0  ;;  %v3306_v43 = vld [vmem:[%s4471_s3 + $0x1] ss:$0 sm:$0xff] }
  0x8f   :  { %2656 = vmatmul.msk.f32.gmra.mxu1 %vm56_vm0, %v267_v44 }
  0x92   :  { %v176_v45 = vpop.f32.mrf.mxu0  ;;  %v3239_v46 = vpop.f32.mrf.mxu1 }
  0x93   :  { %v177_v47 = vadd.f32 %v3229_v36, %v176_v45  ;;  %v282_v45 = vmax.f32 %v219_v41, 0.0 }
  0x95   :  { %v268_v48 = vmax.f32 %v177_v47, 0.0 }
  0x97   :  { %2657 = vmatmul.msk.f32.gmra.mxu1 %vm56_vm0, %v268_v48 }
  0x9a   :  { %v179_v49 = vpop.f32.mrf.mxu0  ;;  %v3243_v50 = vpop.f32.mrf.mxu1 }
  0x9b   :  { %v180_v51 = vadd.f32 %v3229_v36, %v179_v49  ;;  %v222_v49 = vadd.f32 %v3229_v36, %v3235_v42  ;;  %v228_v42 = vadd.f32 %v3229_v36, %v3243_v50 }
  0x9d   :  { %v269_v52 = vmax.f32 %v180_v51, 0.0 }
  0x9f   :  { %2658 = vmatmul.msk.f32.gmra.mxu1 %vm56_vm0, %v269_v52  ;;  %v283_v52 = vmax.f32 %v222_v49, 0.0 }
  0xa2   :  { %v182_v53 = vpop.f32.mrf.mxu0  ;;  %v3247_v54 = vpop.f32.mrf.mxu1 }
  0xa3   :  { %v183_v55 = vadd.f32 %v3229_v36, %v182_v53 }
  0xa5   :  { %v270_v56 = vmax.f32 %v183_v55, 0.0  ;;  %v225_v55 = vadd.f32 %v3229_v36, %v3239_v46  ;;  %v231_v46 = vadd.f32 %v3229_v36, %v3247_v54 }
  0xa7   :  { %2659 = vmatmul.msk.f32.gmra.mxu1 %vm56_vm0, %v270_v56 }
  0xaa   :  { %v185_v57 = vpop.f32.mrf.mxu0  ;;  %v3251_v58 = vpop.f32.mrf.mxu1 }
  0xab   :  { %v186_v59 = vadd.f32 %v3229_v36, %v185_v57  ;;  %v284_v57 = vmax.f32 %v225_v55, 0.0  ;;  %v234_v50 = vadd.f32 %v3229_v36, %v3251_v58 }
  0xad   :  { %v271_v60 = vmax.f32 %v186_v59, 0.0 }
  0xaf   :  { %2660 = vmatmul.msk.f32.gmra.mxu1 %vm56_vm0, %v271_v60 }
  0xb2   :  { %v188_v61 = vpop.f32.mrf.mxu0  ;;  %v3255_v62 = vpop.f32.mrf.mxu1 }
  0xb3   :  { %v189_v63 = vadd.f32 %v3229_v36, %v188_v61  ;;  %v237_v54 = vadd.f32 %v3229_v36, %v3255_v62 }
  0xb5   :  { %v272_v0 = vmax.f32 %v189_v63, 0.0  ;;  %v285_v63 = vmax.f32 %v228_v42, 0.0 }
  0xb7   :  { %2661 = vmatmul.msk.f32.gmra.mxu1 %vm56_vm0, %v272_v0 }
  0xba   :  { %v191_v1 = vpop.f32.mrf.mxu0  ;;  %v3259_v2 = vpop.f32.mrf.mxu1 }
  0xbb   :  { %v192_v3 = vadd.f32 %v3229_v36, %v191_v1  ;;  %v240_v58 = vadd.f32 %v3229_v36, %v3259_v2 }
  0xbd   :  { %v273_v4 = vmax.f32 %v192_v3, 0.0 }
  0xbf   :  { %2662 = vmatmul.msk.f32.gmra.mxu1 %vm56_vm0, %v273_v4  ;;  %v286_v4 = vmax.f32 %v231_v46, 0.0 }
  0xc2   :  { %v194_v5 = vpop.f32.mrf.mxu0  ;;  %v3263_v6 = vpop.f32.mrf.mxu1 }
  0xc3   :  { %v195_v7 = vadd.f32 %v3229_v36, %v194_v5  ;;  %v243_v62 = vadd.f32 %v3229_v36, %v3263_v6 }
  0xc5   :  { %v274_v8 = vmax.f32 %v195_v7, 0.0  ;;  %v290_v25 = vmax.f32 %v243_v62, 0.0 }
  0xc7   :  { %2663 = vmatmul.msk.f32.gmra.mxu1 %vm56_vm0, %v274_v8 }
  0xca   :  { %v197_v9 = vpop.f32.mrf.mxu0  ;;  %v3267_v10 = vpop.f32.mrf.mxu1 }
  0xcb   :  { %v198_v11 = vadd.f32 %v3229_v36, %v197_v9  ;;  %v287_v9 = vmax.f32 %v234_v50, 0.0  ;;  %v246_v2 = vadd.f32 %v3229_v36, %v3267_v10 }
  0xcd   :  { %v275_v12 = vmax.f32 %v198_v11, 0.0 }
  0xcf   :  { %2664 = vmatmul.msk.f32.gmra.mxu1 %vm56_vm0, %v275_v12 }
  0xd2   :  { %v200_v13 = vpop.f32.mrf.mxu0  ;;  %v3271_v14 = vpop.f32.mrf.mxu1 }
  0xd3   :  { %v201_v15 = vadd.f32 %v3229_v36, %v200_v13  ;;  %v249_v6 = vadd.f32 %v3229_v36, %v3271_v14 }
  0xd5   :  { %v276_v16 = vmax.f32 %v201_v15, 0.0  ;;  %v288_v15 = vmax.f32 %v237_v54, 0.0 }
  0xd7   :  { %2665 = vmatmul.msk.f32.gmra.mxu1 %vm56_vm0, %v276_v16 }
  0xda   :  { %v203_v17 = vpop.f32.mrf.mxu0  ;;  %v3275_v18 = vpop.f32.mrf.mxu1 }
  0xdb   :  { %v204_v19 = vadd.f32 %v3229_v36, %v203_v17  ;;  %v252_v10 = vadd.f32 %v3229_v36, %v3275_v18 }
  0xdd   :  { %v277_v20 = vmax.f32 %v204_v19, 0.0 }
  0xdf   :  { %2666 = vmatmul.msk.f32.gmra.mxu1 %vm56_vm0, %v277_v20  ;;  %v289_v20 = vmax.f32 %v240_v58, 0.0 }
  0xe2   :  { %v206_v21 = vpop.f32.mrf.mxu0  ;;  %v3279_v22 = vpop.f32.mrf.mxu1 }
  0xe3   :  { %v207_v23 = vadd.f32 %v3229_v36, %v206_v21  ;;  %v255_v14 = vadd.f32 %v3229_v36, %v3279_v22 }
  0xe5   :  { %v278_v24 = vmax.f32 %v207_v23, 0.0  ;;  %v294_v49 = vmax.f32 %v255_v14, 0.0 }
  0xe7   :  { %2667 = vmatmul.msk.f32.gmra.mxu1 %vm56_vm0, %v278_v24 }
  0xea   :  { %v209_v27 = vpop.f32.mrf.mxu0  ;;  %v3289_v28 = vpop.f32.mrf.mxu1 }
  0xeb   :  { %v210_v29 = vadd.f32 %v3229_v36, %v209_v27  ;;  %v258_v18 = vadd.f32 %v3229_v36, %v3289_v28 }
  0xed   :  { %v279_v30 = vmax.f32 %v210_v29, 0.0 }
  0xef   :  { %2668 = vmatmul.msk.f32.gmra.mxu1 %vm56_vm0, %v279_v30  ;;  %v291_v30 = vmax.f32 %v246_v2, 0.0 }
  0xf2   :  { %v212_v31 = vpop.f32.mrf.mxu0  ;;  %v3293_v32 = vpop.f32.mrf.mxu1 }
  0xf3   :  { %v213_v33 = vadd.f32 %v3229_v36, %v212_v31 }
  0xf5   :  { %v280_v34 = vmax.f32 %v213_v33, 0.0 }
  0xf7   :  { %2669 = vmatmul.msk.f32.gmra.mxu1 %vm56_vm0, %v280_v34 }
  0xfa   :  { %v215_v35 = vpop.f32.mrf.mxu0  ;;  %v3297_v37 = vpop.f32.mrf.mxu1 }
  0xfb   :  { %v216_v39 = vadd.f32 %v3229_v36, %v215_v35  ;;  %v292_v35 = vmax.f32 %v249_v6, 0.0 }
  0xfd   :  { %v281_v40 = vmax.f32 %v216_v39, 0.0 }
  0xff   :  { %2670 = vmatmul.msk.f32.gmra.mxu1 %vm56_vm0, %v281_v40 }
 0x104   :  { %v415_v44 = vpop.f32.mrf.mxu1 }
 0x105   :  { %v416_v47 = vadd.f32 %v3306_v43, %v415_v44  ;;  %v293_v44 = vmax.f32 %v252_v10, 0.0 }
 0x107   :  { %v511_v48 = vmax.f32 %v416_v47, 0.0  ;;  %2671 = vmatmul.msk.f32.gmra.mxu1 %vm56_vm0, %v282_v45 }
 0x109   :  { %2687 = vmatmul.msk.f32.vlgmr.msra.gmra.mxu2 %vm56_vm0, %v511_v48 }
 0x10c   :  { %v418_v51 = vpop.f32.mrf.mxu1 }
 0x10d   :  { %v419_v38 = vadd.f32 %v3306_v43, %v418_v51 }
 0x10f   :  { %v512_v53 = vmax.f32 %v419_v38, 0.0  ;;  %2672 = vmatmul.msk.f32.gmra.mxu1 %vm56_vm0, %v283_v52  ;;  %v1076_v38 = vld [vmem:[%s4469_s2 + $0x30] sm:$0xff] }
 0x110   :  { %1191 = vmatpush.msrb.mxu2 %v1076_v38  ;;  %2849 = vmatpush.msra.mxu3 %v1076_v38 }
 0x111   :  { %2688 = vmatmul.msk.f32.gmra.mxu2 %vm56_vm0, %v512_v53  ;;  %v295_v53 = vmax.f32 %v258_v18, 0.0 }
 0x114   :  { %v421_v56 = vpop.f32.mrf.mxu1 }
 0x115   :  { %v422_v59 = vadd.f32 %v3306_v43, %v421_v56 }
 0x117   :  { %v513_v60 = vmax.f32 %v422_v59, 0.0  ;;  %2673 = vmatmul.msk.f32.gmra.mxu1 %vm56_vm0, %v284_v57  ;;  %v261_v57 = vadd.f32 %v3229_v36, %v3293_v32 }
 0x119   :  { %2689 = vmatmul.msk.f32.gmra.mxu2 %vm56_vm0, %v513_v60  ;;  %v296_v59 = vmax.f32 %v261_v57, 0.0 }
 0x11c   :  { %v424_v61 = vpop.f32.mrf.mxu1 }
 0x11d   :  { %v425_v0 = vadd.f32 %v3306_v43, %v424_v61  ;;  %v264_v61 = vadd.f32 %v3229_v36, %v3297_v37  ;;  %v3394_v36 = vld [vmem:[%s4471_s3 + $0x2] ss:$0 sm:$0xff] }
 0x11f   :  { %v514_v1 = vmax.f32 %v425_v0, 0.0  ;;  %2674 = vmatmul.msk.f32.gmra.mxu1 %vm56_vm0, %v285_v63  ;;  %v297_v0 = vmax.f32 %v264_v61, 0.0 }
 0x121   :  { %2690 = vmatmul.msk.f32.gmra.mxu2 %vm56_vm0, %v514_v1 }
 0x124   :  { %v427_v3 = vpop.f32.mrf.mxu1 }
 0x125   :  { %v428_v5 = vadd.f32 %v3306_v43, %v427_v3 }
 0x127   :  { %v515_v7 = vmax.f32 %v428_v5, 0.0  ;;  %2675 = vmatmul.msk.f32.gmra.mxu1 %vm56_vm0, %v286_v4 }
 0x129   :  { %2691 = vmatmul.msk.f32.gmra.mxu2 %vm56_vm0, %v515_v7 }
 0x12c   :  { %v430_v8 = vpop.f32.mrf.mxu1 }
 0x12d   :  { %v431_v11 = vadd.f32 %v3306_v43, %v430_v8 }
 0x12f   :  { %v516_v12 = vmax.f32 %v431_v11, 0.0  ;;  %2676 = vmatmul.msk.f32.gmra.mxu1 %vm56_vm0, %v287_v9 }
 0x131   :  { %2692 = vmatmul.msk.f32.gmra.mxu2 %vm56_vm0, %v516_v12 }
 0x134   :  { %v433_v13 = vpop.f32.mrf.mxu1 }
 0x135   :  { %v434_v16 = vadd.f32 %v3306_v43, %v433_v13 }
 0x137   :  { %v517_v17 = vmax.f32 %v434_v16, 0.0  ;;  %2677 = vmatmul.msk.f32.gmra.mxu1 %vm56_vm0, %v288_v15 }
 0x139   :  { %2693 = vmatmul.msk.f32.gmra.mxu2 %vm56_vm0, %v517_v17 }
 0x13c   :  { %v436_v19 = vpop.f32.mrf.mxu1 }
 0x13d   :  { %v437_v21 = vadd.f32 %v3306_v43, %v436_v19 }
 0x13f   :  { %v518_v23 = vmax.f32 %v437_v21, 0.0  ;;  %2678 = vmatmul.msk.f32.gmra.mxu1 %vm56_vm0, %v289_v20 }
 0x141   :  { %2694 = vmatmul.msk.f32.gmra.mxu2 %vm56_vm0, %v518_v23 }
 0x144   :  { %v439_v24 = vpop.f32.mrf.mxu1 }
 0x145   :  { %v440_v26 = vadd.f32 %v3306_v43, %v439_v24 }
 0x147   :  { %v519_v27 = vmax.f32 %v440_v26, 0.0  ;;  %2679 = vmatmul.msk.f32.gmra.mxu1 %vm56_vm0, %v290_v25 }
 0x149   :  { %2695 = vmatmul.msk.f32.gmra.mxu2 %vm56_vm0, %v519_v27 }
 0x14c   :  { %v442_v29 = vpop.f32.mrf.mxu1 }
 0x14d   :  { %v443_v31 = vadd.f32 %v3306_v43, %v442_v29 }
 0x14f   :  { %v520_v33 = vmax.f32 %v443_v31, 0.0  ;;  %2680 = vmatmul.msk.f32.gmra.mxu1 %vm56_vm0, %v291_v30 }
 0x151   :  { %2696 = vmatmul.msk.f32.gmra.mxu2 %vm56_vm0, %v520_v33 }
 0x154   :  { %v445_v34 = vpop.f32.mrf.mxu1 }
 0x155   :  { %v446_v39 = vadd.f32 %v3306_v43, %v445_v34 }
 0x157   :  { %v521_v40 = vmax.f32 %v446_v39, 0.0  ;;  %2681 = vmatmul.msk.f32.gmra.mxu1 %vm56_vm0, %v292_v35 }
 0x159   :  { %2697 = vmatmul.msk.f32.gmra.mxu2 %vm56_vm0, %v521_v40 }
 0x15c   :  { %v448_v41 = vpop.f32.mrf.mxu1 }
 0x15d   :  { %v449_v45 = vadd.f32 %v3306_v43, %v448_v41 }
 0x15f   :  { %v522_v47 = vmax.f32 %v449_v45, 0.0  ;;  %2682 = vmatmul.msk.f32.gmra.mxu1 %vm56_vm0, %v293_v44 }
 0x161   :  { %2698 = vmatmul.msk.f32.gmra.mxu2 %vm56_vm0, %v522_v47 }
 0x164   :  { %v451_v48 = vpop.f32.mrf.mxu1 }
 0x165   :  { %v452_v51 = vadd.f32 %v3306_v43, %v451_v48 }
 0x167   :  { %v523_v52 = vmax.f32 %v452_v51, 0.0  ;;  %2683 = vmatmul.msk.f32.gmra.mxu1 %vm56_vm0, %v294_v49 }
 0x169   :  { %2699 = vmatmul.msk.f32.gmra.mxu2 %vm56_vm0, %v523_v52 }
 0x16c   :  { %v454_v22 = vpop.f32.mrf.mxu1 }
 0x16d   :  { %v455_v55 = vadd.f32 %v3306_v43, %v454_v22 }
 0x16f   :  { %v524_v56 = vmax.f32 %v455_v55, 0.0  ;;  %2684 = vmatmul.msk.f32.gmra.mxu1 %vm56_vm0, %v295_v53 }
 0x171   :  { %2700 = vmatmul.msk.f32.gmra.mxu2 %vm56_vm0, %v524_v56 }
 0x174   :  { %v457_v28 = vpop.f32.mrf.mxu1 }
 0x175   :  { %v458_v60 = vadd.f32 %v3306_v43, %v457_v28 }
 0x177   :  { %v525_v42 = vmax.f32 %v458_v60, 0.0  ;;  %2685 = vmatmul.msk.f32.gmra.mxu1 %vm56_vm0, %v296_v59 }
 0x179   :  { %2701 = vmatmul.msk.f32.gmra.mxu2 %vm56_vm0, %v525_v42 }
 0x17c   :  { %v460_v63 = vpop.f32.mrf.mxu1 }
 0x17d   :  { %v461_v1 = vadd.f32 %v3306_v43, %v460_v63 }
 0x17f   :  { %v526_v46 = vmax.f32 %v461_v1, 0.0  ;;  %2686 = vmatmul.msk.f32.gmra.mxu1 %vm56_vm0, %v297_v0 }
 0x181   :  { %2702 = vmatmul.msk.f32.gmra.mxu2 %vm56_vm0, %v526_v46 }
 0x184   :  { %v463_v32 = vpop.f32.mrf.mxu1 }
 0x185   :  { %v464_v3 = vadd.f32 %v3306_v43, %v463_v32 }
 0x187   :  { %v527_v4 = vmax.f32 %v464_v3, 0.0 }
 0x189   :  { %2703 = vmatmul.msk.f32.gmra.mxu2 %vm56_vm0, %v527_v4 }
 0x18c   :  { %v466_v37 = vpop.f32.mrf.mxu1  ;;  %v660_v5 = vpop.f32.mrf.mxu2 }
 0x18d   :  { %v467_v7 = vadd.f32 %v3306_v43, %v466_v37  ;;  %v3398_v50 = vadd.f32 %v3394_v36, %v660_v5 }
 0x18f   :  { %v528_v8 = vmax.f32 %v467_v7, 0.0  ;;  %2419 = vst.msk [vmem:[%s4472_s5] sm:$0xff] %vm1079_vm1, %v3398_v50  ;;  %v788_v9 = vmul.f32 0.5, %v3398_v50 }
 0x191   :  { %2704 = vmatmul.msk.f32.gmra.mxu2 %vm56_vm0, %v528_v8  ;;  %v820_v11 = vmul.f32 1.442695, %v788_v9 }
 0x193   :  { %2857 = vpow2.f32 %v820_v11 }
 0x194   :  { %v469_v12 = vpop.f32.mrf.mxu1  ;;  %v663_v54 = vpop.f32.mrf.mxu2 }
 0x195   :  { %v470_v13 = vadd.f32 %v3306_v43, %v469_v12  ;;  %v3409_v15 = vadd.f32 %v3394_v36, %v663_v54 }
 0x197   :  { %v529_v16 = vmax.f32 %v470_v13, 0.0  ;;  %2420 = vst.msk [vmem:[%s4472_s5 + $0x8] sm:$0xff] %vm1079_vm1, %v3409_v15  ;;  %v789_v17 = vmul.f32 0.5, %v3409_v15 }
 0x199   :  { %v2858_v58 = vpop.eup %2857  ;;  %2705 = vmatmul.msk.f32.gmra.mxu2 %vm56_vm0, %v529_v16  ;;  %v822_v19 = vmul.f32 1.442695, %v789_v17 }
 0x19a   :  { %916 = vrot.lane.b32.xlu0 %v2858_v58, %s3050_s12 }
 0x19b   :  { %2859 = vpow2.f32 %v822_v19 }
 0x19c   :  { %v472_v20 = vpop.f32.mrf.mxu1  ;;  %v666_v21 = vpop.f32.mrf.mxu2 }
 0x19d   :  { %v473_v23 = vadd.f32 %v3306_v43, %v472_v20  ;;  %v3421_v62 = vadd.f32 %v3394_v36, %v666_v21 }
 0x19f   :  { %v530_v24 = vmax.f32 %v473_v23, 0.0  ;;  %2421 = vst.msk [vmem:[%s4472_s5 + $0x10] sm:$0xff] %vm1079_vm1, %v3421_v62  ;;  %v790_v25 = vmul.f32 0.5, %v3421_v62 }
 0x1a1   :  { %v2860_v26 = vpop.eup %2859  ;;  %2706 = vmatmul.msk.f32.gmra.mxu2 %vm56_vm0, %v530_v24  ;;  %v824_v27 = vmul.f32 1.442695, %v790_v25 }
 0x1a2   :  { %918 = vrot.lane.b32.xlu1 %v2860_v26, %s3050_s12 }
 0x1a3   :  { %2861 = vpow2.f32 %v824_v27 }
 0x1a4   :  { %v475_v2 = vpop.f32.mrf.mxu1  ;;  %v669_v29 = vpop.f32.mrf.mxu2 }
 0x1a5   :  { %v476_v30 = vadd.f32 %v3306_v43, %v475_v2  ;;  %v3433_v31 = vadd.f32 %v3394_v36, %v669_v29 }
 0x1a7   :  { %v531_v33 = vmax.f32 %v476_v30, 0.0  ;;  %2422 = vst.msk [vmem:[%s4472_s5 + $0x18] sm:$0xff] %vm1079_vm1, %v3433_v31 }
 0x1a9   :  { %v2862_v6 = vpop.eup %2861  ;;  %2707 = vmatmul.msk.f32.gmra.mxu2 %vm56_vm0, %v531_v33 }
 0x1aa   :  { %920 = vrot.lane.b32.xlu2 %v2862_v6, %s3050_s12 }
 0x1ac   :  { %v478_v34 = vpop.f32.mrf.mxu1  ;;  %v672_v35 = vpop.f32.mrf.mxu2 }
 0x1ad   :  { %v479_v39 = vadd.f32 %v3306_v43, %v478_v34  ;;  %v3444_v40 = vadd.f32 %v3394_v36, %v672_v35  ;;  %v791_v34 = vmul.f32 0.5, %v3433_v31  ;;  %v756_v35 = vld [vmem:[%s4473_s1] sm:$0xff] }
 0x1af   :  { %v532_v10 = vmax.f32 %v479_v39, 0.0  ;;  %2423 = vst.msk [vmem:[%s4472_s5 + $0x20] sm:$0xff] %vm1079_vm1, %v3444_v40 }
 0x1b1   :  { %2708 = vmatmul.msk.f32.gmra.mxu2 %vm56_vm0, %v532_v10 }
 0x1b4   :  { %v481_v41 = vpop.f32.mrf.mxu1  ;;  %v675_v44 = vpop.f32.mrf.mxu2 }
 0x1b5   :  { %v482_v45 = vadd.f32 %v3306_v43, %v481_v41  ;;  %v3454_v47 = vadd.f32 %v3394_v36, %v675_v44 }
 0x1b7   :  { %v533_v14 = vmax.f32 %v482_v45, 0.0  ;;  %2424 = vst.msk [vmem:[%s4472_s5 + $0x28] sm:$0xff] %vm1079_vm1, %v3454_v47  ;;  %v826_v45 = vmul.f32 1.442695, %v791_v34 }
 0x1b9   :  { %2709 = vmatmul.msk.f32.gmra.mxu2 %vm56_vm0, %v533_v14 }
 0x1bc   :  { %v484_v48 = vpop.f32.mrf.mxu1  ;;  %v678_v49 = vpop.f32.mrf.mxu2 }
 0x1bd   :  { %v485_v51 = vadd.f32 %v3306_v43, %v484_v48  ;;  %v3464_v52 = vadd.f32 %v3394_v36, %v678_v49 }
 0x1bf   :  { %v534_v18 = vmax.f32 %v485_v51, 0.0  ;;  %2425 = vst.msk [vmem:[%s4472_s5 + $0x30] sm:$0xff] %vm1079_vm1, %v3464_v52 }
 0x1c1   :  { %2710 = vmatmul.msk.f32.gmra.mxu2 %vm56_vm0, %v534_v18  ;;  %v757_v18 = vld [vmem:[%s4473_s1 + $0x8] sm:$0xff] }
 0x1c4   :  { %v487_v38 = vpop.f32.mrf.mxu1  ;;  %v681_v22 = vpop.f32.mrf.mxu2 }
 0x1c5   :  { %v488_v53 = vadd.f32 %v3306_v43, %v487_v38  ;;  %v3474_v55 = vadd.f32 %v3394_v36, %v681_v22 }
 0x1c7   :  { %v535_v56 = vmax.f32 %v488_v53, 0.0  ;;  %2426 = vst.msk [vmem:[%s4472_s5 + $0x38] sm:$0xff] %vm1079_vm1, %v3474_v55 }
 0x1c9   :  { %2711 = vmatmul.msk.f32.gmra.mxu2 %vm56_vm0, %v535_v56 }
 0x1cc   :  { %v490_v57 = vpop.f32.mrf.mxu1  ;;  %v684_v28 = vpop.f32.mrf.mxu2 }
 0x1cd   :  { %v491_v59 = vadd.f32 %v3306_v43, %v490_v57  ;;  %v3484_v60 = vadd.f32 %v3394_v36, %v684_v28 }
 0x1cf   :  { %v536_v42 = vmax.f32 %v491_v59, 0.0  ;;  %2427 = vst.msk [vmem:[%s4472_s5 + $0x40] sm:$0xff] %vm1079_vm1, %v3484_v60 }
 0x1d1   :  { %2712 = vmatmul.msk.f32.gmra.mxu2 %vm56_vm0, %v536_v42  ;;  %v758_v42 = vld [vmem:[%s4473_s1 + $0x10] sm:$0xff] }
 0x1d4   :  { %v493_v61 = vpop.f32.mrf.mxu1  ;;  %v687_v63 = vpop.f32.mrf.mxu2 }
 0x1d5   :  { %v494_v0 = vadd.f32 %v3306_v43, %v493_v61  ;;  %v3494_v1 = vadd.f32 %v3394_v36, %v687_v63 }
 0x1d7   :  { %v537_v46 = vmax.f32 %v494_v0, 0.0  ;;  %2428 = vst.msk [vmem:[%s4472_s5 + $0x48] sm:$0xff] %vm1079_vm1, %v3494_v1 }
 0x1d9   :  { %2713 = vmatmul.msk.f32.gmra.mxu2 %vm56_vm0, %v537_v46  ;;  %v792_v46 = vmul.f32 0.5, %v3444_v40 }
 0x1dc   :  { %v496_v32 = vpop.f32.mrf.mxu1  ;;  %v690_v3 = vpop.f32.mrf.mxu2 }
 0x1dd   :  { %v497_v4 = vadd.f32 %v3306_v43, %v496_v32  ;;  %v3504_v37 = vadd.f32 %v3394_v36, %v690_v3 }
 0x1df   :  { %v538_v5 = vmax.f32 %v497_v4, 0.0  ;;  %2429 = vst.msk [vmem:[%s4472_s5 + $0x50] sm:$0xff] %vm1079_vm1, %v3504_v37 }
 0x1e1   :  { %2714 = vmatmul.msk.f32.gmra.mxu2 %vm56_vm0, %v538_v5  ;;  %v828_v5 = vmul.f32 1.442695, %v792_v46 }
 0x1e4   :  { %v499_v7 = vpop.f32.mrf.mxu1  ;;  %v693_v8 = vpop.f32.mrf.mxu2 }
 0x1e5   :  { %v500_v9 = vadd.f32 %v3306_v43, %v499_v7  ;;  %v3514_v11 = vadd.f32 %v3394_v36, %v693_v8 }
 0x1e7   :  { %v539_v12 = vmax.f32 %v500_v9, 0.0  ;;  %2430 = vst.msk [vmem:[%s4472_s5 + $0x58] sm:$0xff] %vm1079_vm1, %v3514_v11 }
 0x1e9   :  { %2715 = vmatmul.msk.f32.gmra.mxu2 %vm56_vm0, %v539_v12 }
 0x1ec   :  { %v502_v54 = vpop.f32.mrf.mxu1  ;;  %v696_v13 = vpop.f32.mrf.mxu2 }
 0x1ed   :  { %v503_v16 = vadd.f32 %v3306_v43, %v502_v54  ;;  %v3524_v17 = vadd.f32 %v3394_v36, %v696_v13  ;;  %v793_v54 = vmul.f32 0.5, %v3454_v47 }
 0x1ef   :  { %v540_v58 = vmax.f32 %v503_v16, 0.0  ;;  %2431 = vst.msk [vmem:[%s4472_s5 + $0x60] sm:$0xff] %vm1079_vm1, %v3524_v17 }
 0x1f1   :  { %2716 = vmatmul.msk.f32.gmra.mxu2 %vm56_vm0, %v540_v58  ;;  %v830_v58 = vmul.f32 1.442695, %v793_v54 }
 0x1f4   :  { %v505_v19 = vpop.f32.mrf.mxu1  ;;  %v699_v20 = vpop.f32.mrf.mxu2 }
 0x1f5   :  { %v506_v21 = vadd.f32 %v3306_v43, %v505_v19  ;;  %v3534_v23 = vadd.f32 %v3394_v36, %v699_v20 }
 0x1f7   :  { %v541_v24 = vmax.f32 %v506_v21, 0.0  ;;  %2432 = vst.msk [vmem:[%s4472_s5 + $0x68] sm:$0xff] %vm1079_vm1, %v3534_v23 }
 0x1f9   :  { %2717 = vmatmul.msk.f32.gmra.mxu2 %vm56_vm0, %v541_v24 }
 0x1fc   :  { %v508_v25 = vpop.f32.mrf.mxu1  ;;  %v702_v26 = vpop.f32.mrf.mxu2 }
 0x1fd   :  { %v509_v27 = vadd.f32 %v3306_v43, %v508_v25  ;;  %v3544_v2 = vadd.f32 %v3394_v36, %v702_v26  ;;  %v794_v25 = vmul.f32 0.5, %v3464_v52 }
 0x1ff   :  { %v542_v29 = vmax.f32 %v509_v27, 0.0  ;;  %2433 = vst.msk [vmem:[%s4472_s5 + $0x70] sm:$0xff] %vm1079_vm1, %v3544_v2 }
 0x201   :  { %2718 = vmatmul.msk.f32.gmra.mxu2 %vm56_vm0, %v542_v29  ;;  %v832_v29 = vmul.f32 1.442695, %v794_v25 }
 0x204   :  { %v705_v30 = vpop.f32.mrf.mxu2  ;;  %v921_v61 = vpop.permute.xlu2 %920 }
 0x205   :  { %v3553_v33 = vadd.f32 %v3394_v36, %v705_v30  ;;  %v1014_v32 = vmul.f32 %v921_v61, %v758_v42  ;;  %v797_v42 = vmul.f32 0.5, %v3494_v1 }
 0x207   :  { %v803_v6 = vmul.f32 0.5, %v3553_v33  ;;  %2434 = vst.msk [vmem:[%s4472_s5 + $0x78] sm:$0xff] %vm1079_vm1, %v3553_v33  ;;  %v1046_v7 = vadd.f32 %v1014_v32, %v3421_v62 }
 0x209   :  { %v850_v43 = vmul.f32 1.442695, %v803_v6 }
 0x20b   :  { %2863 = vpow2.f32 %v850_v43 }
 0x20c   :  { %v708_v39 = vpop.f32.mrf.mxu2  ;;  %v917_v10 = vpop.permute.xlu0 %916  ;;  %2865 = vpow2.f32 %v826_v45 }
 0x20d   :  { %v3566_v41 = vadd.f32 %v3394_v36, %v708_v39  ;;  %v1012_v44 = vmul.f32 %v917_v10, %v756_v35  ;;  %v795_v35 = vmul.f32 0.5, %v3474_v55 }
 0x20f   :  { %v804_v14 = vmul.f32 0.5, %v3566_v41  ;;  %2435 = vst.msk [vmem:[%s4472_s5 + $0x80] sm:$0xff] %vm1079_vm1, %v3566_v41  ;;  %v1044_v48 = vadd.f32 %v1012_v44, %v3398_v50  ;;  %v834_v44 = vmul.f32 1.442695, %v795_v35 }
 0x211   :  { %v2864_v49 = vpop.eup %2863  ;;  %v852_v51 = vmul.f32 1.442695, %v804_v14  ;;  %2719 = vmatmul.msk.f32.vlgmr.msrb.gmra.mxu2 %vm1079_vm1, %v1044_v48 }
 0x212   :  { %946 = vrot.lane.b32.xlu0 %v2864_v49, %s3050_s12  ;;  %v2866_v59 = vpop.eup %2865 }
 0x213   :  { %2867 = vpow2.f32 %v852_v51  ;;  %v796_v51 = vmul.f32 0.5, %v3484_v60 }
 0x214   :  { %v711_v38 = vpop.f32.mrf.mxu2  ;;  %v919_v22 = vpop.permute.xlu1 %918 }
 0x215   :  { %v3581_v53 = vadd.f32 %v3394_v36, %v711_v38  ;;  %v1013_v56 = vmul.f32 %v919_v22, %v757_v18  ;;  %v836_v22 = vmul.f32 1.442695, %v796_v51 }
 0x217   :  { %v805_v57 = vmul.f32 0.5, %v3581_v53  ;;  %2436 = vst.msk [vmem:[%s4472_s5 + $0x88] sm:$0xff] %vm1079_vm1, %v3581_v53  ;;  %v1045_v28 = vadd.f32 %v1013_v56, %v3409_v15 }
 0x219   :  { %v2868_v63 = vpop.eup %2867  ;;  %v854_v0 = vmul.f32 1.442695, %v805_v57  ;;  %2720 = vmatmul.msk.f32.gmra.mxu2 %vm1079_vm1, %v1045_v28 }
 0x21a   :  { %948 = vrot.lane.b32.xlu1 %v2868_v63, %s3050_s12  ;;  %922 = vrot.lane.b32.xlu0 %v2866_v59, %s3050_s12 }
 0x21b   :  { %2869 = vpow2.f32 %v854_v0  ;;  %v838_v0 = vmul.f32 1.442695, %v797_v42  ;;  %v802_v42 = vmul.f32 0.5, %v3544_v2 }
 0x21c   :  { %v714_v3 = vpop.f32.mrf.mxu2  ;;  %2871 = vpow2.f32 %v828_v5 }
 0x21d   :  { %v3598_v4 = vadd.f32 %v3394_v36, %v714_v3 }
 0x21f   :  { %v806_v8 = vmul.f32 0.5, %v3598_v4  ;;  %2437 = vst.msk [vmem:[%s4472_s5 + $0x90] sm:$0xff] %vm1079_vm1, %v3598_v4 }
 0x221   :  { %v2870_v9 = vpop.eup %2869  ;;  %v856_v12 = vmul.f32 1.442695, %v806_v8  ;;  %2721 = vmatmul.msk.f32.gmra.mxu2 %vm1079_vm1, %v1046_v7  ;;  %v798_v7 = vmul.f32 0.5, %v3504_v37 }
 0x222   :  { %950 = vrot.lane.b32.xlu2 %v2870_v9, %s3050_s12  ;;  %v2872_v20 = vpop.eup %2871 }
 0x223   :  { %2873 = vpow2.f32 %v856_v12  ;;  %v840_v12 = vmul.f32 1.442695, %v798_v7 }
 0x224   :  { %v717_v13 = vpop.f32.mrf.mxu2  ;;  %2875 = vpow2.f32 %v830_v58 }
 0x225   :  { %v3611_v16 = vadd.f32 %v3394_v36, %v717_v13 }
 0x227   :  { %v807_v19 = vmul.f32 0.5, %v3611_v16  ;;  %2438 = vst.msk [vmem:[%s4472_s5 + $0x98] sm:$0xff] %vm1079_vm1, %v3611_v16 }
 0x229   :  { %v2874_v21 = vpop.eup %2873  ;;  %v858_v24 = vmul.f32 1.442695, %v807_v19 }
 0x22a   :  { %924 = vrot.lane.b32.xlu2 %v2872_v20, %s3050_s12  ;;  %952 = vrot.lane.b32.xlu1 %v2874_v21, %s3050_s12  ;;  %v2876_v6 = vpop.eup %2875  ;;  %v799_v20 = vmul.f32 0.5, %v3514_v11 }
 0x22b   :  { %2877 = vpow2.f32 %v858_v24 }
 0x22c   :  { %v720_v26 = vpop.f32.mrf.mxu2  ;;  %2879 = vpow2.f32 %v832_v29  ;;  %v842_v25 = vmul.f32 1.442695, %v799_v20 }
 0x22d   :  { %v3623_v27 = vadd.f32 %v3394_v36, %v720_v26 }
 0x22f   :  { %v808_v30 = vmul.f32 0.5, %v3623_v27  ;;  %2439 = vst.msk [vmem:[%s4472_s5 + $0xa0] sm:$0xff] %vm1079_vm1, %v3623_v27 }
 0x231   :  { %v2878_v43 = vpop.eup %2877  ;;  %v860_v34 = vmul.f32 1.442695, %v808_v30 }
 0x232   :  { %926 = vrot.lane.b32.xlu1 %v2876_v6, %s3050_s12  ;;  %954 = vrot.lane.b32.xlu0 %v2878_v43, %s3050_s12  ;;  %v2880_v14 = vpop.eup %2879  ;;  %v800_v43 = vmul.f32 0.5, %v3524_v17 }
 0x233   :  { %2881 = vpow2.f32 %v860_v34 }
 0x234   :  { %v723_v39 = vpop.f32.mrf.mxu2  ;;  %2883 = vpow2.f32 %v834_v44 }
 0x235   :  { %v3635_v10 = vadd.f32 %v3394_v36, %v723_v39  ;;  %v844_v39 = vmul.f32 1.442695, %v800_v43 }
 0x237   :  { %v809_v45 = vmul.f32 0.5, %v3635_v10  ;;  %2440 = vst.msk [vmem:[%s4472_s5 + $0xa8] sm:$0xff] %vm1079_vm1, %v3635_v10 }
 0x239   :  { %v2882_v48 = vpop.eup %2881  ;;  %v862_v49 = vmul.f32 1.442695, %v809_v45 }
 0x23a   :  { %956 = vrot.lane.b32.xlu2 %v2882_v48, %s3050_s12  ;;  %928 = vrot.lane.b32.xlu0 %v2880_v14, %s3050_s12  ;;  %v2884_v57 = vpop.eup %2883 }
 0x23b   :  { %2885 = vpow2.f32 %v862_v49  ;;  %v801_v49 = vmul.f32 0.5, %v3534_v23 }
 0x23c   :  { %v726_v18 = vpop.f32.mrf.mxu2  ;;  %2887 = vpow2.f32 %v836_v22 }
 0x23d   :  { %v3647_v38 = vadd.f32 %v3394_v36, %v726_v18  ;;  %v846_v22 = vmul.f32 1.442695, %v801_v49 }
 0x23f   :  { %v810_v56 = vmul.f32 0.5, %v3647_v38  ;;  %2441 = vst.msk [vmem:[%s4472_s5 + $0xb0] sm:$0xff] %vm1079_vm1, %v3647_v38 }
 0x241   :  { %v2886_v28 = vpop.eup %2885  ;;  %v864_v59 = vmul.f32 1.442695, %v810_v56 }
 0x242   :  { %930 = vrot.lane.b32.xlu2 %v2884_v57, %s3050_s12  ;;  %958 = vrot.lane.b32.xlu1 %v2886_v28, %s3050_s12  ;;  %v2888_v32 = vpop.eup %2887 }
 0x243   :  { %2889 = vpow2.f32 %v864_v59 }
 0x244   :  { %v729_v61 = vpop.f32.mrf.mxu2  ;;  %2891 = vpow2.f32 %v838_v0 }
 0x245   :  { %v3659_v63 = vadd.f32 %v3394_v36, %v729_v61  ;;  %v1322_v61 = vld [vmem:[%s4469_s2 + $0x48] sm:$0xff] }
 0x246   :  { %1435 = vmatpush.msrb.mxu3 %v1322_v61 }
 0x247   :  { %v811_v46 = vmul.f32 0.5, %v3659_v63  ;;  %2442 = vst.msk [vmem:[%s4472_s5 + $0xb8] sm:$0xff] %vm1079_vm1, %v3659_v63 }
 0x249   :  { %v2890_v3 = vpop.eup %2889  ;;  %v866_v5 = vmul.f32 1.442695, %v811_v46 }
 0x24a   :  { %932 = vrot.lane.b32.xlu1 %v2888_v32, %s3050_s12  ;;  %960 = vrot.lane.b32.xlu0 %v2890_v3, %s3050_s12  ;;  %v2892_v13 = vpop.eup %2891  ;;  %v848_v32 = vmul.f32 1.442695, %v802_v42 }
 0x24b   :  { %2893 = vpow2.f32 %v866_v5 }
 0x24c   :  { %v732_v8 = vpop.f32.mrf.mxu2  ;;  %2895 = vpow2.f32 %v840_v12 }
 0x24d   :  { %v3671_v9 = vadd.f32 %v3394_v36, %v732_v8 }
 0x24f   :  { %v812_v54 = vmul.f32 0.5, %v3671_v9  ;;  %2443 = vst.msk [vmem:[%s4472_s5 + $0xc0] sm:$0xff] %vm1079_vm1, %v3671_v9 }
 0x251   :  { %v2894_v58 = vpop.eup %2893  ;;  %v868_v19 = vmul.f32 1.442695, %v812_v54 }
 0x252   :  { %962 = vrot.lane.b32.xlu2 %v2894_v58, %s3050_s12  ;;  %934 = vrot.lane.b32.xlu0 %v2892_v13, %s3050_s12  ;;  %v2896_v29 = vpop.eup %2895 }
 0x253   :  { %2897 = vpow2.f32 %v868_v19 }
 0x254   :  { %v735_v21 = vpop.f32.mrf.mxu2  ;;  %2899 = vpow2.f32 %v842_v25 }
 0x255   :  { %v3683_v24 = vadd.f32 %v3394_v36, %v735_v21 }
 0x257   :  { %v813_v26 = vmul.f32 0.5, %v3683_v24  ;;  %2444 = vst.msk [vmem:[%s4472_s5 + $0xc8] sm:$0xff] %vm1079_vm1, %v3683_v24 }
 0x259   :  { %v2898_v30 = vpop.eup %2897  ;;  %v870_v6 = vmul.f32 1.442695, %v813_v26 }
 0x25a   :  { %936 = vrot.lane.b32.xlu2 %v2896_v29, %s3050_s12  ;;  %964 = vrot.lane.b32.xlu1 %v2898_v30, %s3050_s12  ;;  %v2900_v45 = vpop.eup %2899 }
 0x25b   :  { %2901 = vpow2.f32 %v870_v6  ;;  %v771_v6 = vld [vmem:[%s4473_s1 + $0x78] sm:$0xff] }
 0x25c   :  { %v738_v34 = vpop.f32.mrf.mxu2  ;;  %2903 = vpow2.f32 %v844_v39 }
 0x25d   :  { %v3695_v35 = vadd.f32 %v3394_v36, %v738_v34 }
 0x25f   :  { %v814_v44 = vmul.f32 0.5, %v3695_v35  ;;  %2445 = vst.msk [vmem:[%s4472_s5 + $0xd0] sm:$0xff] %vm1079_vm1, %v3695_v35 }
 0x261   :  { %v2902_v14 = vpop.eup %2901  ;;  %v872_v48 = vmul.f32 1.442695, %v814_v44 }
 0x262   :  { %938 = vrot.lane.b32.xlu1 %v2900_v45, %s3050_s12  ;;  %966 = vrot.lane.b32.xlu0 %v2902_v14, %s3050_s12  ;;  %v2904_v57 = vpop.eup %2903 }
 0x263   :  { %2905 = vpow2.f32 %v872_v48 }
 0x264   :  { %v741_v51 = vpop.f32.mrf.mxu2  ;;  %2907 = vpow2.f32 %v846_v22  ;;  %v759_v22 = vld [vmem:[%s4473_s1 + $0x18] sm:$0xff] }
 0x265   :  { %v3707_v18 = vadd.f32 %v3394_v36, %v741_v51 }
 0x267   :  { %v815_v56 = vmul.f32 0.5, %v3707_v18  ;;  %2446 = vst.msk [vmem:[%s4472_s5 + $0xd8] sm:$0xff] %vm1079_vm1, %v3707_v18 }
 0x269   :  { %v2906_v28 = vpop.eup %2905  ;;  %v874_v59 = vmul.f32 1.442695, %v815_v56 }
 0x26a   :  { %968 = vrot.lane.b32.xlu2 %v2906_v28, %s3050_s12  ;;  %940 = vrot.lane.b32.xlu0 %v2904_v57, %s3050_s12  ;;  %v2908_v5 = vpop.eup %2907 }
 0x26b   :  { %2909 = vpow2.f32 %v874_v59 }
 0x26c   :  { %v744_v0 = vpop.f32.mrf.mxu2  ;;  %2911 = vpow2.f32 %v848_v32  ;;  %v760_v32 = vld [vmem:[%s4473_s1 + $0x20] sm:$0xff] }
 0x26d   :  { %v3722_v46 = vadd.f32 %v3394_v36, %v744_v0  ;;  %v773_v0 = vld [vmem:[%s4473_s1 + $0x88] sm:$0xff] }
 0x26f   :  { %v816_v3 = vmul.f32 0.5, %v3722_v46  ;;  %2447 = vst.msk [vmem:[%s4472_s5 + $0xe0] sm:$0xff] %vm1079_vm1, %v3722_v46 }
 0x271   :  { %v2910_v7 = vpop.eup %2909  ;;  %v876_v8 = vmul.f32 1.442695, %v816_v3 }
 0x272   :  { %942 = vrot.lane.b32.xlu2 %v2908_v5, %s3050_s12  ;;  %970 = vrot.lane.b32.xlu1 %v2910_v7, %s3050_s12  ;;  %v2912_v58 = vpop.eup %2911 }
 0x273   :  { %2913 = vpow2.f32 %v876_v8 }
 0x274   :  { %v747_v12 = vpop.f32.mrf.mxu2 }
 0x275   :  { %v3733_v54 = vadd.f32 %v3394_v36, %v747_v12 }
 0x277   :  { %v817_v13 = vmul.f32 0.5, %v3733_v54  ;;  %2448 = vst.msk [vmem:[%s4472_s5 + $0xe8] sm:$0xff] %vm1079_vm1, %v3733_v54 }
 0x279   :  { %v2914_v19 = vpop.eup %2913  ;;  %v878_v20 = vmul.f32 1.442695, %v817_v13  ;;  %v774_v13 = vld [vmem:[%s4473_s1 + $0x90] sm:$0xff] }
 0x27a   :  { %944 = vrot.lane.b32.xlu1 %v2912_v58, %s3050_s12  ;;  %972 = vrot.lane.b32.xlu0 %v2914_v19, %s3050_s12  ;;  %v761_v19 = vld [vmem:[%s4473_s1 + $0x28] sm:$0xff] }
 0x27b   :  { %2915 = vpow2.f32 %v878_v20 }
 0x27c   :  { %v750_v21 = vpop.f32.mrf.mxu2  ;;  %v951_v45 = vpop.permute.xlu2 %950 }
 0x27d   :  { %v3744_v25 = vadd.f32 %v3394_v36, %v750_v21  ;;  %v1029_v5 = vmul.f32 %v951_v45, %v773_v0 }
 0x27f   :  { %v818_v26 = vmul.f32 0.5, %v3744_v25  ;;  %2449 = vst.msk [vmem:[%s4472_s5 + $0xf0] sm:$0xff] %vm1079_vm1, %v3744_v25  ;;  %v1061_v8 = vadd.f32 %v1029_v5, %v3581_v53 }
 0x281   :  { %v2916_v29 = vpop.eup %2915  ;;  %v880_v30 = vmul.f32 1.442695, %v818_v26 }
 0x282   :  { %974 = vrot.lane.b32.xlu2 %v2916_v29, %s3050_s12 }
 0x283   :  { %2917 = vpow2.f32 %v880_v30 }
 0x284   :  { %v753_v43 = vpop.f32.mrf.mxu2  ;;  %v947_v39 = vpop.permute.xlu0 %946 }
 0x285   :  { %v3757_v34 = vadd.f32 %v3394_v36, %v753_v43  ;;  %v1027_v44 = vmul.f32 %v947_v39, %v771_v6  ;;  %v772_v36 = vld [vmem:[%s4473_s1 + $0x80] sm:$0xff]  ;;  %v925_v3 = vpop.permute.xlu2 %924  ;;  %v762_v39 = vld [vmem:[%s4473_s1 + $0x30] sm:$0xff] }
 0x286   :  { %v1016_v7 = vmul.f32 %v925_v3, %v760_v32  ;;  %v776_v43 = vld [vmem:[%s4473_s1 + $0xa0] sm:$0xff] }
 0x287   :  { %v819_v14 = vmul.f32 0.5, %v3757_v34  ;;  %2450 = vst.msk [vmem:[%s4472_s5 + $0xf8] sm:$0xff] %vm1079_vm1, %v3757_v34  ;;  %v1059_v48 = vadd.f32 %v1027_v44, %v3553_v33 }
 0x288   :  { %v1048_v12 = vadd.f32 %v1016_v7, %v3444_v40  ;;  %v779_v7 = vld [vmem:[%s4473_s1 + $0xb8] sm:$0xff] }
 0x289   :  { %v2918_v49 = vpop.eup %2917  ;;  %v882_v51 = vmul.f32 1.442695, %v819_v14  ;;  %2734 = vmatmul.msk.f32.vlgmr.msra.gmra.mxu3 %vm1079_vm1, %v1059_v48 }
 0x28a   :  { %2483 = vrot.lane.b32.xlu2 %v3398_v50, %s3050_s12  ;;  %976 = vrot.lane.b32.xlu0 %v2918_v49, %s3050_s12  ;;  %v1321_v49 = vld [vmem:[%s4469_s2 + $0x40] sm:$0xff] }
 0x28b   :  { %2919 = vpow2.f32 %v882_v51  ;;  %1436 = vmatpush.msrb.mxu3 %v1321_v49 }
 0x28c   :  { %v949_v56 = vpop.permute.xlu1 %948  ;;  %v923_v28 = vpop.permute.xlu0 %922 }
 0x28d   :  { %v1028_v57 = vmul.f32 %v949_v56, %v772_v36  ;;  %v1015_v59 = vmul.f32 %v923_v28, %v759_v22  ;;  %v763_v36 = vld [vmem:[%s4473_s1 + $0x38] sm:$0xff]  ;;  %v777_v22 = vld [vmem:[%s4473_s1 + $0xa8] sm:$0xff] }
 0x28f   :  { %v1060_v42 = vadd.f32 %v1028_v57, %v3566_v41  ;;  %v1047_v61 = vadd.f32 %v1015_v59, %v3433_v31 }
 0x291   :  { %v2920_v50 = vpop.eup %2919  ;;  %2722 = vmatmul.msk.f32.gmra.mxu2 %vm1079_vm1, %v1047_v61  ;;  %2735 = vmatmul.msk.f32.gmra.mxu3 %vm1079_vm1, %v1060_v42  ;;  %v764_v61 = vld [vmem:[%s4473_s1 + $0x40] sm:$0xff] }
 0x292   :  { %978 = vrot.lane.b32.xlu1 %v2920_v50, %s3050_s12  ;;  %2489 = vrot.lane.b32.xlu2 %v3433_v31, %s3050_s12 }
 0x293   :  { %2485 = vrot.lane.b32.xlu0 %v3409_v15, %s3050_s12 }
 0x294   :  { %v957_v21 = vpop.permute.xlu2 %956 }
 0x299   :  { %2723 = vmatmul.msk.f32.gmra.mxu2 %vm1079_vm1, %v1048_v12  ;;  %2736 = vmatmul.msk.f32.gmra.mxu3 %vm1079_vm1, %v1061_v8 }
 0x29a   :  { %2487 = vrot.lane.b32.xlu1 %v3421_v62, %s3050_s12  ;;  %2495 = vrot.lane.b32.xlu2 %v3464_v52, %s3050_s12  ;;  %v775_v62 = vld [vmem:[%s4473_s1 + $0x98] sm:$0xff] }
 0x29b   :  { %2491 = vrot.lane.b32.xlu0 %v3444_v40, %s3050_s12 }
 0x29c   :  { %v953_v15 = vpop.permute.xlu1 %952  ;;  %v931_v14 = vpop.permute.xlu2 %930 }
 0x29d   :  { %v1030_v31 = vmul.f32 %v953_v15, %v774_v13 }
 0x29f   :  { %v1062_v58 = vadd.f32 %v1030_v31, %v3598_v4  ;;  %v766_v31 = vld [vmem:[%s4473_s1 + $0x50] sm:$0xff] }
 0x2a1   :  { %2737 = vmatmul.msk.f32.gmra.mxu3 %vm1079_vm1, %v1062_v58 }
 0x2a2   :  { %2493 = vrot.lane.b32.xlu1 %v3454_v47, %s3050_s12  ;;  %2501 = vrot.lane.b32.xlu2 %v3494_v1, %s3050_s12 }
 0x2a3   :  { %2497 = vrot.lane.b32.xlu0 %v3474_v55, %s3050_s12 }
 0x2a4   :  { %v927_v40 = vpop.permute.xlu1 %926  ;;  %v955_v20 = vpop.permute.xlu0 %954 }
 0x2a5   :  { %v1017_v26 = vmul.f32 %v927_v40, %v761_v19  ;;  %v1031_v29 = vmul.f32 %v955_v20, %v775_v62  ;;  %v781_v40 = vld [vmem:[%s4473_s1 + $0xc8] sm:$0xff] }
 0x2a7   :  { %v1049_v30 = vadd.f32 %v1017_v26, %v3454_v47  ;;  %v1063_v6 = vadd.f32 %v1031_v29, %v3611_v16  ;;  %v1032_v47 = vmul.f32 %v957_v21, %v776_v43 }
 0x2a9   :  { %2724 = vmatmul.msk.f32.gmra.mxu2 %vm1079_vm1, %v1049_v30  ;;  %2738 = vmatmul.msk.f32.gmra.mxu3 %vm1079_vm1, %v1063_v6  ;;  %v1064_v51 = vadd.f32 %v1032_v47, %v3623_v27  ;;  %v782_v30 = vld [vmem:[%s4473_s1 + $0xd0] sm:$0xff] }
 0x2aa   :  { %2499 = vrot.lane.b32.xlu1 %v3484_v60, %s3050_s12  ;;  %2507 = vrot.lane.b32.xlu2 %v3524_v17, %s3050_s12 }
 0x2ab   :  { %2503 = vrot.lane.b32.xlu0 %v3504_v37, %s3050_s12 }
 0x2ac   :  { %v929_v44 = vpop.permute.xlu0 %928  ;;  %v963_v59 = vpop.permute.xlu2 %962 }
 0x2ad   :  { %v1018_v45 = vmul.f32 %v929_v44, %v762_v39  ;;  %v769_v44 = vld [vmem:[%s4473_s1 + $0x68] sm:$0xff] }
 0x2af   :  { %v1050_v48 = vadd.f32 %v1018_v45, %v3464_v52  ;;  %v1019_v52 = vmul.f32 %v931_v14, %v763_v36  ;;  %v783_v45 = vld [vmem:[%s4473_s1 + $0xd8] sm:$0xff]  ;;  %v770_v36 = vld [vmem:[%s4473_s1 + $0x70] sm:$0xff] }
 0x2b1   :  { %2725 = vmatmul.msk.f32.gmra.mxu2 %vm1079_vm1, %v1050_v48  ;;  %2739 = vmatmul.msk.f32.gmra.mxu3 %vm1079_vm1, %v1064_v51  ;;  %v1051_v28 = vadd.f32 %v1019_v52, %v3474_v55 }
 0x2b2   :  { %2505 = vrot.lane.b32.xlu1 %v3514_v11, %s3050_s12  ;;  %2513 = vrot.lane.b32.xlu2 %v3553_v33, %s3050_s12  ;;  %v778_v33 = vld [vmem:[%s4473_s1 + $0xb0] sm:$0xff] }
 0x2b3   :  { %2509 = vrot.lane.b32.xlu0 %v3534_v23, %s3050_s12 }
 0x2b4   :  { %v959_v56 = vpop.permute.xlu1 %958  ;;  %v937_v8 = vpop.permute.xlu2 %936 }
 0x2b5   :  { %v1033_v57 = vmul.f32 %v959_v56, %v777_v22  ;;  %v784_v22 = vld [vmem:[%s4473_s1 + $0xe0] sm:$0xff] }
 0x2b7   :  { %v1065_v42 = vadd.f32 %v1033_v57, %v3635_v10 }
 0x2b9   :  { %2726 = vmatmul.msk.f32.gmra.mxu2 %vm1079_vm1, %v1051_v28  ;;  %2740 = vmatmul.msk.f32.gmra.mxu3 %vm1079_vm1, %v1065_v42  ;;  %v785_v42 = vld [vmem:[%s4473_s1 + $0xe8] sm:$0xff] }
 0x2ba   :  { %2511 = vrot.lane.b32.xlu1 %v3544_v2, %s3050_s12  ;;  %2519 = vrot.lane.b32.xlu2 %v3598_v4, %s3050_s12 }
 0x2bb   :  { %2515 = vrot.lane.b32.xlu0 %v3566_v41, %s3050_s12  ;;  %v765_v41 = vld [vmem:[%s4473_s1 + $0x48] sm:$0xff] }
 0x2bc   :  { %v933_v55 = vpop.permute.xlu1 %932  ;;  %v961_v50 = vpop.permute.xlu0 %960 }
 0x2bd   :  { %v1020_v0 = vmul.f32 %v933_v55, %v764_v61  ;;  %v1034_v32 = vmul.f32 %v961_v50, %v778_v33 }
 0x2bf   :  { %v1052_v3 = vadd.f32 %v1020_v0, %v3484_v60  ;;  %v1066_v5 = vadd.f32 %v1034_v32, %v3647_v38  ;;  %v1035_v60 = vmul.f32 %v963_v59, %v779_v7  ;;  %v1193_v32 = vpop.f32.mrf.mxu2 }
 0x2c1   :  { %2727 = vmatmul.msk.f32.gmra.mxu2 %vm1079_vm1, %v1052_v3  ;;  %2741 = vmatmul.msk.f32.gmra.mxu3 %vm1079_vm1, %v1066_v5  ;;  %v1067_v15 = vadd.f32 %v1035_v60, %v3659_v63  ;;  %v787_v5 = vld [vmem:[%s4473_s1 + $0xf8] sm:$0xff] }
 0x2c2   :  { %2517 = vrot.lane.b32.xlu1 %v3581_v53, %s3050_s12  ;;  %2525 = vrot.lane.b32.xlu2 %v3635_v10, %s3050_s12  ;;  %v780_v53 = vld [vmem:[%s4473_s1 + $0xc0] sm:$0xff] }
 0x2c3   :  { %2521 = vrot.lane.b32.xlu0 %v3611_v16, %s3050_s12  ;;  %v1022_v16 = vmul.f32 %v937_v8, %v766_v31 }
 0x2c4   :  { %v935_v4 = vpop.permute.xlu0 %934  ;;  %v969_v58 = vpop.permute.xlu2 %968 }
 0x2c5   :  { %v1021_v12 = vmul.f32 %v935_v4, %v765_v41  ;;  %v1054_v19 = vadd.f32 %v1022_v16, %v3504_v37 }
 0x2c7   :  { %v1053_v13 = vadd.f32 %v1021_v12, %v3494_v1  ;;  %v1196_v4 = vpop.f32.mrf.mxu2 }
 0x2c9   :  { %2728 = vmatmul.msk.f32.gmra.mxu2 %vm1079_vm1, %v1053_v13  ;;  %2742 = vmatmul.msk.f32.gmra.mxu3 %vm1079_vm1, %v1067_v15 }
 0x2ca   :  { %2523 = vrot.lane.b32.xlu1 %v3623_v27, %s3050_s12  ;;  %2531 = vrot.lane.b32.xlu2 %v3671_v9, %s3050_s12  ;;  %v767_v27 = vld [vmem:[%s4473_s1 + $0x58] sm:$0xff] }
 0x2cb   :  { %2527 = vrot.lane.b32.xlu0 %v3647_v38, %s3050_s12 }
 0x2cc   :  { %v965_v1 = vpop.permute.xlu1 %964  ;;  %v943_v20 = vpop.permute.xlu2 %942 }
 0x2cd   :  { %v1036_v10 = vmul.f32 %v965_v1, %v780_v53  ;;  %v1025_v14 = vmul.f32 %v943_v20, %v769_v44 }
 0x2cf   :  { %v1068_v62 = vadd.f32 %v1036_v10, %v3671_v9  ;;  %v1057_v49 = vadd.f32 %v1025_v14, %v3534_v23  ;;  %v1199_v16 = vpop.f32.mrf.mxu2 }
 0x2d1   :  { %2729 = vmatmul.msk.f32.gmra.mxu2 %vm1079_vm1, %v1054_v19  ;;  %2743 = vmatmul.msk.f32.gmra.mxu3 %vm1079_vm1, %v1068_v62 }
 0x2d2   :  { %2529 = vrot.lane.b32.xlu1 %v3659_v63, %s3050_s12  ;;  %2537 = vrot.lane.b32.xlu2 %v3707_v18, %s3050_s12  ;;  %v768_v63 = vld [vmem:[%s4473_s1 + $0x60] sm:$0xff] }
 0x2d3   :  { %2533 = vrot.lane.b32.xlu0 %v3683_v24, %s3050_s12 }
 0x2d4   :  { %v939_v37 = vpop.permute.xlu1 %938  ;;  %v967_v38 = vpop.permute.xlu0 %966 }
 0x2d5   :  { %v1023_v9 = vmul.f32 %v939_v37, %v767_v27  ;;  %v1037_v21 = vmul.f32 %v967_v38, %v781_v40 }
 0x2d7   :  { %v1055_v26 = vadd.f32 %v1023_v9, %v3514_v11  ;;  %v1069_v29 = vadd.f32 %v1037_v21, %v3683_v24  ;;  %v1038_v11 = vmul.f32 %v969_v58, %v782_v30 }
 0x2d9   :  { %2730 = vmatmul.msk.f32.gmra.mxu2 %vm1079_vm1, %v1055_v26  ;;  %2744 = vmatmul.msk.f32.gmra.mxu3 %vm1079_vm1, %v1069_v29  ;;  %v1070_v47 = vadd.f32 %v1038_v11, %v3695_v35 }
 0x2da   :  { %2535 = vrot.lane.b32.xlu1 %v3695_v35, %s3050_s12  ;;  %2543 = vrot.lane.b32.xlu2 %v3744_v25, %s3050_s12 }
 0x2db   :  { %2539 = vrot.lane.b32.xlu0 %v3722_v46, %s3050_s12 }
 0x2dc   :  { %v975_v24 = vpop.permute.xlu2 %974  ;;  %v941_v6 = vpop.permute.xlu0 %940 }
 0x2dd   :  { %v1024_v43 = vmul.f32 %v941_v6, %v768_v63  ;;  %v1041_v61 = vmul.f32 %v975_v24, %v785_v42 }
 0x2df   :  { %v1056_v39 = vadd.f32 %v1024_v43, %v3524_v17  ;;  %v1073_v55 = vadd.f32 %v1041_v61, %v3733_v54 }
 0x2e1   :  { %2731 = vmatmul.msk.f32.gmra.mxu2 %vm1079_vm1, %v1056_v39  ;;  %2745 = vmatmul.msk.f32.gmra.mxu3 %vm1079_vm1, %v1070_v47 }
 0x2e2   :  { %2541 = vrot.lane.b32.xlu1 %v3733_v54, %s3050_s12 }
 0x2e3   :  { %2545 = vrot.lane.b32.xlu0 %v3757_v34, %s3050_s12 }
 0x2e4   :  { %v971_v17 = vpop.permute.xlu1 %970  ;;  %v2484_v35 = vpop.permute.xlu2 %2483 }
 0x2e5   :  { %v1039_v48 = vmul.f32 %v971_v17, %v783_v45  ;;  %2579 = vst.msk [vmem:[%s4474_s6] sm:$0xff] %vm1079_vm1, %v2484_v35 }
 0x2e7   :  { %v1071_v51 = vadd.f32 %v1039_v48, %v3707_v18 }
 0x2e9   :  { %2732 = vmatmul.msk.f32.gmra.mxu2 %vm1079_vm1, %v1057_v49  ;;  %2746 = vmatmul.msk.f32.gmra.mxu3 %vm1079_vm1, %v1071_v51 }
 0x2ec   :  { %v945_v52 = vpop.permute.xlu1 %944  ;;  %v973_v56 = vpop.permute.xlu0 %972 }
 0x2ed   :  { %v1026_v57 = vmul.f32 %v945_v52, %v770_v36  ;;  %v2490_v28 = vpop.permute.xlu2 %2489  ;;  %v1040_v59 = vmul.f32 %v973_v56, %v784_v22 }
 0x2ee   :  { %2582 = vst.msk [vmem:[%s4474_s6 + $0x18] sm:$0xff] %vm1079_vm1, %v2490_v28  ;;  %v1566_v28 = vld [vmem:[%s4469_s2 + $0x50] sm:$0xff] }
 0x2ef   :  { %v1058_v23 = vadd.f32 %v1026_v57, %v3544_v2  ;;  %v1072_v18 = vadd.f32 %v1040_v59, %v3722_v46  ;;  %v1567_v2 = vld [vmem:[%s4469_s2 + $0x58] sm:$0xff]  ;;  %v786_v46 = vld [vmem:[%s4473_s1 + $0xf0] sm:$0xff] }
 0x2f0   :  { %1680 = vmatpush.msrb.mxu0 %v1567_v2 }
 0x2f1   :  { %2733 = vmatmul.msk.f32.gmra.mxu2 %vm1079_vm1, %v1058_v23  ;;  %2747 = vmatmul.msk.f32.gmra.mxu3 %vm1079_vm1, %v1072_v18 }
 0x2f2   :  { %1681 = vmatpush.msrb.mxu0 %v1566_v28 }
 0x2f5   :  { %v2496_v33 = vpop.permute.xlu2 %2495 }
 0x2f6   :  { %2585 = vst.msk [vmem:[%s4474_s6 + $0x30] sm:$0xff] %vm1079_vm1, %v2496_v33 }
 0x2f9   :  { %2748 = vmatmul.msk.f32.gmra.mxu3 %vm1079_vm1, %v1073_v55 }
 0x2fc   :  { %v977_v0 = vpop.permute.xlu0 %976 }
 0x2fd   :  { %v2502_v50 = vpop.permute.xlu2 %2501  ;;  %v1042_v54 = vmul.f32 %v977_v0, %v786_v46 }
 0x2fe   :  { %2588 = vst.msk [vmem:[%s4474_s6 + $0x48] sm:$0xff] %vm1079_vm1, %v2502_v50 }
 0x2ff   :  { %v1074_v3 = vadd.f32 %v1042_v54, %v3744_v25  ;;  %v4004_v25 = vld [vmem:[%s4471_s3 + $0x3] ss:$0 sm:$0xff] }
 0x300   :  { %v1194_v13 = vadd.f32 %v4004_v25, %v1193_v32  ;;  %v1197_v1 = vadd.f32 %v4004_v25, %v1196_v4  ;;  %v1200_v37 = vadd.f32 %v4004_v25, %v1199_v16 }
 0x301   :  { %2749 = vmatmul.msk.f32.gmra.mxu3 %vm1079_vm1, %v1074_v3 }
 0x302   :  { %v1290_v40 = vmax.f32 %v1197_v1, 0.0  ;;  %v1291_v29 = vmax.f32 %v1200_v37, 0.0 }
 0x304   :  { %v979_v7 = vpop.permute.xlu1 %978 }
 0x305   :  { %v2508_v8 = vpop.permute.xlu2 %2507  ;;  %v1043_v41 = vmul.f32 %v979_v7, %v787_v5  ;;  %v2486_v60 = vpop.permute.xlu0 %2485 }
 0x306   :  { %2591 = vst.msk [vmem:[%s4474_s6 + $0x60] sm:$0xff] %vm1079_vm1, %v2508_v8 }
 0x307   :  { %2580 = vst.msk [vmem:[%s4474_s6 + $0x8] sm:$0xff] %vm1079_vm1, %v2486_v60  ;;  %v1075_v12 = vadd.f32 %v1043_v41, %v3757_v34  ;;  %v1289_v34 = vmax.f32 %v1194_v13, 0.0 }
 0x309   :  { %2750 = vmatmul.msk.f32.gmra.mxu3 %vm1079_vm1, %v1075_v12 }
 0x30c   :  { %v2488_v15 = vpop.permute.xlu1 %2487  ;;  %v4013_v58 = vpop.f32.mrf.mxu3 }
 0x30d   :  { %v2514_v31 = vpop.permute.xlu2 %2513  ;;  %2581 = vst.msk [vmem:[%s4474_s6 + $0x10] sm:$0xff] %vm1079_vm1, %v2488_v15  ;;  %v2492_v53 = vpop.permute.xlu0 %2491 }
 0x30e   :  { %2594 = vst.msk [vmem:[%s4474_s6 + $0x78] sm:$0xff] %vm1079_vm1, %v2514_v31 }
 0x30f   :  { %2583 = vst.msk [vmem:[%s4474_s6 + $0x20] sm:$0xff] %vm1079_vm1, %v2492_v53 }
 0x311   :  { %2751 = vmatmul.msk.f32.vlgmr.msrb.gmra.mxu3 %vm56_vm0, %v1289_v34 }
 0x314   :  { %v2494_v10 = vpop.permute.xlu1 %2493  ;;  %v4029_v62 = vpop.f32.mrf.mxu3 }
 0x315   :  { %v2520_v19 = vpop.permute.xlu2 %2519  ;;  %2584 = vst.msk [vmem:[%s4474_s6 + $0x28] sm:$0xff] %vm1079_vm1, %v2494_v10  ;;  %v2498_v27 = vpop.permute.xlu0 %2497 }
 0x316   :  { %2597 = vst.msk [vmem:[%s4474_s6 + $0x90] sm:$0xff] %vm1079_vm1, %v2520_v19  ;;  %v1202_v20 = vpop.f32.mrf.mxu2 }
 0x317   :  { %2586 = vst.msk [vmem:[%s4474_s6 + $0x38] sm:$0xff] %vm1079_vm1, %v2498_v27  ;;  %v1203_v30 = vadd.f32 %v4004_v25, %v1202_v20 }
 0x319   :  { %2752 = vmatmul.msk.f32.gmra.mxu3 %vm56_vm0, %v1290_v40  ;;  %v1292_v39 = vmax.f32 %v1203_v30, 0.0 }
 0x31c   :  { %v2500_v38 = vpop.permute.xlu1 %2499  ;;  %v4045_v21 = vpop.f32.mrf.mxu3 }
 0x31d   :  { %v2526_v9 = vpop.permute.xlu2 %2525  ;;  %2587 = vst.msk [vmem:[%s4474_s6 + $0x40] sm:$0xff] %vm1079_vm1, %v2500_v38  ;;  %v2504_v26 = vpop.permute.xlu0 %2503 }
 0x31e   :  { %2600 = vst.msk [vmem:[%s4474_s6 + $0xa8] sm:$0xff] %vm1079_vm1, %v2526_v9  ;;  %v1205_v63 = vpop.f32.mrf.mxu2 }
 0x31f   :  { %2589 = vst.msk [vmem:[%s4474_s6 + $0x50] sm:$0xff] %vm1079_vm1, %v2504_v26  ;;  %v1206_v47 = vadd.f32 %v4004_v25, %v1205_v63 }
 0x321   :  { %2753 = vmatmul.msk.f32.gmra.mxu3 %vm56_vm0, %v1291_v29  ;;  %v1293_v48 = vmax.f32 %v1206_v47, 0.0 }
 0x324   :  { %v2506_v11 = vpop.permute.xlu1 %2505  ;;  %v4061_v6 = vpop.f32.mrf.mxu3 }
 0x325   :  { %v2532_v24 = vpop.permute.xlu2 %2531  ;;  %2590 = vst.msk [vmem:[%s4474_s6 + $0x58] sm:$0xff] %vm1079_vm1, %v2506_v11  ;;  %v2510_v43 = vpop.permute.xlu0 %2509 }
 0x326   :  { %2603 = vst.msk [vmem:[%s4474_s6 + $0xc0] sm:$0xff] %vm1079_vm1, %v2532_v24 }
 0x327   :  { %2592 = vst.msk [vmem:[%s4474_s6 + $0x68] sm:$0xff] %vm1079_vm1, %v2510_v43 }
 0x329   :  { %2754 = vmatmul.msk.f32.gmra.mxu3 %vm56_vm0, %v1292_v39  ;;  %v1239_v39 = vadd.f32 %v4004_v25, %v4013_v58  ;;  %v1245_v58 = vadd.f32 %v4004_v25, %v4045_v21 }
 0x32c   :  { %v1208_v44 = vpop.f32.mrf.mxu2  ;;  %v2512_v45 = vpop.permute.xlu1 %2511 }
 0x32d   :  { %v2538_v14 = vpop.permute.xlu2 %2537  ;;  %2593 = vst.msk [vmem:[%s4474_s6 + $0x70] sm:$0xff] %vm1079_vm1, %v2512_v45  ;;  %v4077_v17 = vpop.f32.mrf.mxu3  ;;  %v1209_v49 = vadd.f32 %v4004_v25, %v1208_v44  ;;  %v1304_v44 = vmax.f32 %v1239_v39, 0.0  ;;  %v1242_v45 = vadd.f32 %v4004_v25, %v4029_v62  ;;  %v1248_v62 = vadd.f32 %v4004_v25, %v4061_v6 }
 0x32e   :  { %2606 = vst.msk [vmem:[%s4474_s6 + $0xd8] sm:$0xff] %vm1079_vm1, %v2538_v14  ;;  %v2516_v35 = vpop.permute.xlu0 %2515  ;;  %v1251_v21 = vadd.f32 %v4004_v25, %v4077_v17 }
 0x32f   :  { %2595 = vst.msk [vmem:[%s4474_s6 + $0x80] sm:$0xff] %vm1079_vm1, %v2516_v35  ;;  %v1294_v57 = vmax.f32 %v1209_v49, 0.0  ;;  %v1305_v35 = vmax.f32 %v1242_v45, 0.0  ;;  %v1307_v28 = vmax.f32 %v1248_v62, 0.0 }
 0x331   :  { %2755 = vmatmul.msk.f32.gmra.mxu3 %vm56_vm0, %v1293_v48  ;;  %v4188_v48 = vld [vmem:[%s4471_s3 + $0x4] ss:$0 sm:$0xff] }
 0x334   :  { %v1211_v51 = vpop.f32.mrf.mxu2  ;;  %v2518_v36 = vpop.permute.xlu1 %2517 }
 0x335   :  { %v2544_v22 = vpop.permute.xlu2 %2543  ;;  %2596 = vst.msk [vmem:[%s4474_s6 + $0x88] sm:$0xff] %vm1079_vm1, %v2518_v36  ;;  %v4093_v52 = vpop.f32.mrf.mxu3  ;;  %v1212_v59 = vadd.f32 %v4004_v25, %v1211_v51  ;;  %v1306_v36 = vmax.f32 %v1245_v58, 0.0 }
 0x336   :  { %2609 = vst.msk [vmem:[%s4474_s6 + $0xf0] sm:$0xff] %vm1079_vm1, %v2544_v22  ;;  %v2522_v56 = vpop.permute.xlu0 %2521  ;;  %v1254_v6 = vadd.f32 %v4004_v25, %v4093_v52 }
 0x337   :  { %2598 = vst.msk [vmem:[%s4474_s6 + $0x98] sm:$0xff] %vm1079_vm1, %v2522_v56  ;;  %v1295_v33 = vmax.f32 %v1212_v59, 0.0 }
 0x339   :  { %2756 = vmatmul.msk.f32.gmra.mxu3 %vm56_vm0, %v1294_v57 }
 0x33c   :  { %v1214_v23 = vpop.f32.mrf.mxu2  ;;  %v2524_v18 = vpop.permute.xlu1 %2523 }
 0x33d   :  { %2599 = vst.msk [vmem:[%s4474_s6 + $0xa0] sm:$0xff] %vm1079_vm1, %v2524_v18  ;;  %v4112_v42 = vpop.f32.mrf.mxu3  ;;  %v1215_v55 = vadd.f32 %v4004_v25, %v1214_v23 }
 0x33e   :  { %v2528_v61 = vpop.permute.xlu0 %2527  ;;  %v1257_v17 = vadd.f32 %v4004_v25, %v4112_v42 }
 0x33f   :  { %2601 = vst.msk [vmem:[%s4474_s6 + $0xb0] sm:$0xff] %vm1079_vm1, %v2528_v61  ;;  %v1296_v32 = vmax.f32 %v1215_v55, 0.0  ;;  %v1308_v61 = vmax.f32 %v1251_v21, 0.0 }
 0x341   :  { %2757 = vmatmul.msk.f32.gmra.mxu3 %vm56_vm0, %v1295_v33 }
 0x344   :  { %v1217_v2 = vpop.f32.mrf.mxu2  ;;  %v2530_v46 = vpop.permute.xlu1 %2529 }
 0x345   :  { %2602 = vst.msk [vmem:[%s4474_s6 + $0xb8] sm:$0xff] %vm1079_vm1, %v2530_v46  ;;  %v4124_v50 = vpop.f32.mrf.mxu3  ;;  %v1218_v54 = vadd.f32 %v4004_v25, %v1217_v2  ;;  %v1309_v46 = vmax.f32 %v1254_v6, 0.0 }
 0x346   :  { %v2534_v0 = vpop.permute.xlu0 %2533  ;;  %v1260_v52 = vadd.f32 %v4004_v25, %v4124_v50 }
 0x347   :  { %2604 = vst.msk [vmem:[%s4474_s6 + $0xc8] sm:$0xff] %vm1079_vm1, %v2534_v0  ;;  %v1297_v41 = vmax.f32 %v1218_v54, 0.0 }
 0x349   :  { %2758 = vmatmul.msk.f32.gmra.mxu3 %vm56_vm0, %v1296_v32 }
 0x34c   :  { %v1220_v3 = vpop.f32.mrf.mxu2  ;;  %v2536_v5 = vpop.permute.xlu1 %2535 }
 0x34d   :  { %2605 = vst.msk [vmem:[%s4474_s6 + $0xd0] sm:$0xff] %vm1079_vm1, %v2536_v5  ;;  %v4136_v7 = vpop.f32.mrf.mxu3  ;;  %v1221_v60 = vadd.f32 %v4004_v25, %v1220_v3  ;;  %v1310_v3 = vmax.f32 %v1257_v17, 0.0 }
 0x34e   :  { %v2540_v8 = vpop.permute.xlu0 %2539  ;;  %v1263_v42 = vadd.f32 %v4004_v25, %v4136_v7 }
 0x34f   :  { %2607 = vst.msk [vmem:[%s4474_s6 + $0xe0] sm:$0xff] %vm1079_vm1, %v2540_v8  ;;  %v1298_v31 = vmax.f32 %v1221_v60, 0.0  ;;  %v1311_v60 = vmax.f32 %v1260_v52, 0.0 }
 0x351   :  { %2759 = vmatmul.msk.f32.gmra.mxu3 %vm56_vm0, %v1297_v41 }
 0x354   :  { %v1223_v4 = vpop.f32.mrf.mxu2  ;;  %v2542_v12 = vpop.permute.xlu1 %2541 }
 0x355   :  { %2608 = vst.msk [vmem:[%s4474_s6 + $0xe8] sm:$0xff] %vm1079_vm1, %v2542_v12  ;;  %v4148_v13 = vpop.f32.mrf.mxu3  ;;  %v1224_v53 = vadd.f32 %v4004_v25, %v1223_v4 }
 0x356   :  { %v2546_v15 = vpop.permute.xlu0 %2545  ;;  %v1266_v50 = vadd.f32 %v4004_v25, %v4148_v13 }
 0x357   :  { %2610 = vst.msk [vmem:[%s4474_s6 + $0xf8] sm:$0xff] %vm1079_vm1, %v2546_v15  ;;  %v1299_v1 = vmax.f32 %v1224_v53, 0.0 }
 0x359   :  { %2760 = vmatmul.msk.f32.gmra.mxu3 %vm56_vm0, %v1298_v31  ;;  %v1312_v31 = vmax.f32 %v1263_v42, 0.0 }
 0x35c   :  { %v1226_v34 = vpop.f32.mrf.mxu2 }
 0x35d   :  { %v4156_v16 = vpop.f32.mrf.mxu3  ;;  %v1227_v10 = vadd.f32 %v4004_v25, %v1226_v34 }
 0x35e   :  { %v1269_v7 = vadd.f32 %v4004_v25, %v4156_v16 }
 0x35f   :  { %v1300_v40 = vmax.f32 %v1227_v10, 0.0  ;;  %v1313_v10 = vmax.f32 %v1266_v50, 0.0 }
 0x361   :  { %2761 = vmatmul.msk.f32.gmra.mxu3 %vm56_vm0, %v1299_v1 }
 0x364   :  { %v1229_v19 = vpop.f32.mrf.mxu2 }
 0x365   :  { %v4160_v27 = vpop.f32.mrf.mxu3  ;;  %v1230_v20 = vadd.f32 %v4004_v25, %v1229_v19 }
 0x366   :  { %v1272_v13 = vadd.f32 %v4004_v25, %v4160_v27 }
 0x367   :  { %v1301_v9 = vmax.f32 %v1230_v20, 0.0 }
 0x369   :  { %2762 = vmatmul.msk.f32.gmra.mxu3 %vm56_vm0, %v1300_v40 }
 0x36c   :  { %v1232_v38 = vpop.f32.mrf.mxu2 }
 0x36d   :  { %v4164_v37 = vpop.f32.mrf.mxu3  ;;  %v1233_v26 = vadd.f32 %v4004_v25, %v1232_v38  ;;  %v1314_v38 = vmax.f32 %v1269_v7, 0.0 }
 0x36e   :  { %v1275_v16 = vadd.f32 %v4004_v25, %v4164_v37 }
 0x36f   :  { %v1302_v30 = vmax.f32 %v1233_v26, 0.0 }
 0x371   :  { %2763 = vmatmul.msk.f32.gmra.mxu3 %vm56_vm0, %v1301_v9 }
 0x374   :  { %v1235_v63 = vpop.f32.mrf.mxu2 }
 0x375   :  { %v4168_v29 = vpop.f32.mrf.mxu3  ;;  %v1236_v11 = vadd.f32 %v4004_v25, %v1235_v63  ;;  %v1315_v63 = vmax.f32 %v1272_v13, 0.0 }
 0x376   :  { %v1278_v27 = vadd.f32 %v4004_v25, %v4168_v29 }
 0x377   :  { %v1303_v43 = vmax.f32 %v1236_v11, 0.0 }
 0x379   :  { %2764 = vmatmul.msk.f32.gmra.mxu3 %vm56_vm0, %v1302_v30 }
 0x37d   :  { %v4172_v24 = vpop.f32.mrf.mxu3 }
 0x37e   :  { %v1281_v37 = vadd.f32 %v4004_v25, %v4172_v24 }
 0x380   :  { %v1318_v62 = vmax.f32 %v1281_v37, 0.0 }
 0x381   :  { %2765 = vmatmul.msk.f32.gmra.mxu3 %vm56_vm0, %v1303_v43 }
 0x385   :  { %v4177_v47 = vpop.f32.mrf.mxu3 }
 0x386   :  { %v1284_v29 = vadd.f32 %v4004_v25, %v4177_v47 }
 0x389   :  { %2766 = vmatmul.msk.f32.gmra.mxu3 %vm56_vm0, %v1304_v44  ;;  %v1316_v44 = vmax.f32 %v1275_v16, 0.0 }
 0x38d   :  { %v4182_v14 = vpop.f32.mrf.mxu3 }
 0x38e   :  { %v1287_v24 = vadd.f32 %v4004_v25, %v4182_v14 }
 0x391   :  { %2767 = vmatmul.msk.f32.gmra.mxu3 %vm56_vm0, %v1305_v35 }
 0x395   :  { %v1438_v49 = vpop.f32.mrf.mxu3 }
 0x396   :  { %v1439_v51 = vadd.f32 %v4188_v48, %v1438_v49  ;;  %v1317_v49 = vmax.f32 %v1278_v27, 0.0 }
 0x398   :  { %v1534_v22 = vmax.f32 %v1439_v51, 0.0 }
 0x399   :  { %2768 = vmatmul.msk.f32.gmra.mxu3 %vm56_vm0, %v1306_v36 }
 0x39a   :  { %2783 = vmatmul.msk.f32.vlgmr.msrb.gmra.mxu0 %vm56_vm0, %v1534_v22 }
 0x39d   :  { %v1441_v56 = vpop.f32.mrf.mxu3 }
 0x39e   :  { %v1442_v57 = vadd.f32 %v4188_v48, %v1441_v56 }
 0x3a0   :  { %v1535_v59 = vmax.f32 %v1442_v57, 0.0 }
 0x3a1   :  { %2769 = vmatmul.msk.f32.gmra.mxu3 %vm56_vm0, %v1307_v28 }
 0x3a2   :  { %2784 = vmatmul.msk.f32.gmra.mxu0 %vm56_vm0, %v1535_v59  ;;  %v1319_v59 = vmax.f32 %v1284_v29, 0.0 }
 0x3a5   :  { %v1444_v23 = vpop.f32.mrf.mxu3 }
 0x3a6   :  { %v1445_v18 = vadd.f32 %v4188_v48, %v1444_v23 }
 0x3a8   :  { %v1536_v33 = vmax.f32 %v1445_v18, 0.0 }
 0x3a9   :  { %2770 = vmatmul.msk.f32.gmra.mxu3 %vm56_vm0, %v1308_v61  ;;  %v1320_v61 = vmax.f32 %v1287_v24, 0.0 }
 0x3aa   :  { %2785 = vmatmul.msk.f32.gmra.mxu0 %vm56_vm0, %v1536_v33 }
 0x3ad   :  { %v1447_v55 = vpop.f32.mrf.mxu3 }
 0x3ae   :  { %v1448_v2 = vadd.f32 %v4188_v48, %v1447_v55 }
 0x3b0   :  { %v1537_v0 = vmax.f32 %v1448_v2, 0.0  ;;  %v4270_v2 = vld [vmem:[%s4471_s3 + $0x5] ss:$0 sm:$0xff] }
 0x3b1   :  { %2771 = vmatmul.msk.f32.gmra.mxu3 %vm56_vm0, %v1309_v46 }
 0x3b2   :  { %2786 = vmatmul.msk.f32.gmra.mxu0 %vm56_vm0, %v1537_v0 }
 0x3b5   :  { %v1450_v32 = vpop.f32.mrf.mxu3 }
 0x3b6   :  { %v1451_v54 = vadd.f32 %v4188_v48, %v1450_v32 }
 0x3b8   :  { %v1538_v5 = vmax.f32 %v1451_v54, 0.0 }
 0x3b9   :  { %2772 = vmatmul.msk.f32.gmra.mxu3 %vm56_vm0, %v1310_v3 }
 0x3ba   :  { %2787 = vmatmul.msk.f32.gmra.mxu0 %vm56_vm0, %v1538_v5 }
 0x3bd   :  { %v1453_v8 = vpop.f32.mrf.mxu3 }
 0x3be   :  { %v1454_v41 = vadd.f32 %v4188_v48, %v1453_v8 }
 0x3c0   :  { %v1539_v4 = vmax.f32 %v1454_v41, 0.0 }
 0x3c1   :  { %2773 = vmatmul.msk.f32.gmra.mxu3 %vm56_vm0, %v1311_v60 }
 0x3c2   :  { %2788 = vmatmul.msk.f32.gmra.mxu0 %vm56_vm0, %v1539_v4 }
 0x3c5   :  { %v1456_v12 = vpop.f32.mrf.mxu3 }
 0x3c6   :  { %v1457_v15 = vadd.f32 %v4188_v48, %v1456_v12 }
 0x3c8   :  { %v1540_v53 = vmax.f32 %v1457_v15, 0.0 }
 0x3c9   :  { %2774 = vmatmul.msk.f32.gmra.mxu3 %vm56_vm0, %v1312_v31 }
 0x3ca   :  { %2789 = vmatmul.msk.f32.gmra.mxu0 %vm56_vm0, %v1540_v53 }
 0x3cd   :  { %v1459_v34 = vpop.f32.mrf.mxu3 }
 0x3ce   :  { %v1460_v1 = vadd.f32 %v4188_v48, %v1459_v34 }
 0x3d0   :  { %v1541_v19 = vmax.f32 %v1460_v1, 0.0 }
 0x3d1   :  { %2775 = vmatmul.msk.f32.gmra.mxu3 %vm56_vm0, %v1313_v10 }
 0x3d2   :  { %2790 = vmatmul.msk.f32.gmra.mxu0 %vm56_vm0, %v1541_v19 }
 0x3d5   :  { %v1462_v40 = vpop.f32.mrf.mxu3 }
 0x3d6   :  { %v1463_v20 = vadd.f32 %v4188_v48, %v1462_v40 }
 0x3d8   :  { %v1542_v9 = vmax.f32 %v1463_v20, 0.0 }
 0x3d9   :  { %2776 = vmatmul.msk.f32.gmra.mxu3 %vm56_vm0, %v1314_v38 }
 0x3da   :  { %2791 = vmatmul.msk.f32.gmra.mxu0 %vm56_vm0, %v1542_v9 }
 0x3dd   :  { %v1465_v26 = vpop.f32.mrf.mxu3 }
 0x3de   :  { %v1466_v30 = vadd.f32 %v4188_v48, %v1465_v26 }
 0x3e0   :  { %v1543_v11 = vmax.f32 %v1466_v30, 0.0 }
 0x3e1   :  { %2777 = vmatmul.msk.f32.gmra.mxu3 %vm56_vm0, %v1315_v63 }
 0x3e2   :  { %2792 = vmatmul.msk.f32.gmra.mxu0 %vm56_vm0, %v1543_v11 }
 0x3e5   :  { %v1468_v43 = vpop.f32.mrf.mxu3 }
 0x3e6   :  { %v1469_v39 = vadd.f32 %v4188_v48, %v1468_v43 }
 0x3e8   :  { %v1544_v45 = vmax.f32 %v1469_v39, 0.0 }
 0x3e9   :  { %2778 = vmatmul.msk.f32.gmra.mxu3 %vm56_vm0, %v1316_v44 }
 0x3ea   :  { %2793 = vmatmul.msk.f32.gmra.mxu0 %vm56_vm0, %v1544_v45 }
 0x3ed   :  { %v1471_v35 = vpop.f32.mrf.mxu3 }
 0x3ee   :  { %v1472_v58 = vadd.f32 %v4188_v48, %v1471_v35 }
 0x3f0   :  { %v1545_v51 = vmax.f32 %v1472_v58, 0.0 }
 0x3f1   :  { %2779 = vmatmul.msk.f32.gmra.mxu3 %vm56_vm0, %v1317_v49 }
 0x3f2   :  { %2794 = vmatmul.msk.f32.gmra.mxu0 %vm56_vm0, %v1545_v51 }
 0x3f5   :  { %v1474_v36 = vpop.f32.mrf.mxu3 }
 0x3f6   :  { %v1475_v22 = vadd.f32 %v4188_v48, %v1474_v36 }
 0x3f8   :  { %v1546_v56 = vmax.f32 %v1475_v22, 0.0 }
 0x3f9   :  { %2780 = vmatmul.msk.f32.gmra.mxu3 %vm56_vm0, %v1318_v62 }
 0x3fa   :  { %2795 = vmatmul.msk.f32.gmra.mxu0 %vm56_vm0, %v1546_v56 }
 0x3fd   :  { %v1477_v57 = vpop.f32.mrf.mxu3 }
 0x3fe   :  { %v1478_v28 = vadd.f32 %v4188_v48, %v1477_v57 }
 0x400   :  { %v1547_v21 = vmax.f32 %v1478_v28, 0.0 }
 0x401   :  { %2781 = vmatmul.msk.f32.gmra.mxu3 %vm56_vm0, %v1319_v59 }
 0x402   :  { %2796 = vmatmul.msk.f32.gmra.mxu0 %vm56_vm0, %v1547_v21 }
 0x405   :  { %v1480_v23 = vpop.f32.mrf.mxu3 }
 0x406   :  { %v1481_v18 = vadd.f32 %v4188_v48, %v1480_v23 }
 0x408   :  { %v1548_v33 = vmax.f32 %v1481_v18, 0.0 }
 0x409   :  { %2782 = vmatmul.msk.f32.gmra.mxu3 %vm56_vm0, %v1320_v61 }
 0x40a   :  { %2797 = vmatmul.msk.f32.gmra.mxu0 %vm56_vm0, %v1548_v33 }
 0x40d   :  { %v1483_v47 = vpop.f32.mrf.mxu3 }
 0x40e   :  { %v1484_v6 = vadd.f32 %v4188_v48, %v1483_v47 }
 0x410   :  { %v1549_v55 = vmax.f32 %v1484_v6, 0.0 }
 0x412   :  { %2798 = vmatmul.msk.f32.gmra.mxu0 %vm56_vm0, %v1549_v55 }
 0x415   :  { %v1486_v25 = vpop.f32.mrf.mxu3 }
 0x416   :  { %v1487_v14 = vadd.f32 %v4188_v48, %v1486_v25 }
 0x417   :  { %v1683_v46 = vpop.f32.mrf.mxu0 }
 0x418   :  { %v1550_v0 = vmax.f32 %v1487_v14, 0.0  ;;  %v1684_v17 = vadd.f32 %v4270_v2, %v1683_v46 }
 0x41a   :  { %v2815_v32 = vmul.f32 -1.442695, %v1684_v17  ;;  %2799 = vmatmul.msk.f32.gmra.mxu0 %vm56_vm0, %v1550_v0 }
 0x41c   :  { %2921 = vpow2.f32 %v2815_v32 }
 0x41d   :  { %v1489_v54 = vpop.f32.mrf.mxu3 }
 0x41e   :  { %v1490_v3 = vadd.f32 %v4188_v48, %v1489_v54 }
 0x41f   :  { %v1686_v5 = vpop.f32.mrf.mxu0 }
 0x420   :  { %v1551_v52 = vmax.f32 %v1490_v3, 0.0  ;;  %v1687_v8 = vadd.f32 %v4270_v2, %v1686_v5 }
 0x422   :  { %v2922_v41 = vpop.eup %2921  ;;  %v2816_v60 = vmul.f32 -1.442695, %v1687_v8  ;;  %2800 = vmatmul.msk.f32.gmra.mxu0 %vm56_vm0, %v1551_v52 }
 0x423   :  { %v1875_v4 = vadd.f32 1.0, %v2922_v41 }
 0x424   :  { %2923 = vpow2.f32 %v2816_v60 }
 0x425   :  { %2925 = vrcp.f32 %v1875_v4  ;;  %v1492_v42 = vpop.f32.mrf.mxu3  ;;  %v1916_v38 = vand.u32 2147483647, %v1875_v4  ;;  %v1918_v9 = vand.u32 2147483648, %v1875_v4  ;;  %vm1912_vm3 = vweird.f32 %v1875_v4 }
 0x426   :  { %v1493_v12 = vadd.f32 %v4188_v48, %v1492_v42 }
 0x427   :  { %v1689_v15 = vpop.f32.mrf.mxu0  ;;  %v1919_v44 = vor.u32 1.1754944e-38, %v1918_v9  ;;  %vm1917_vm5 = vcmp.eq.f32.partialorder %v1916_v38, 8.507059e+37 }
 0x428   :  { %v1552_v31 = vmax.f32 %v1493_v12, 0.0  ;;  %v1690_v53 = vadd.f32 %v4270_v2, %v1689_v15 }
 0x42a   :  { %v2924_v50 = vpop.eup %2923  ;;  %v2817_v34 = vmul.f32 -1.442695, %v1690_v53  ;;  %2801 = vmatmul.msk.f32.gmra.mxu0 %vm56_vm0, %v1552_v31 }
 0x42b   :  { %v2926_v1 = vpop.eup %2925  ;;  %v1876_v10 = vadd.f32 1.0, %v2924_v50 }
 0x42c   :  { %v1908_v19 = vmul.f32 %v2926_v1, %v1875_v4  ;;  %2927 = vpow2.f32 %v2817_v34  ;;  %vm1913_vm2 = vweird.f32 %v2926_v1 }
 0x42d   :  { %2929 = vrcp.f32 %v1876_v10  ;;  %v1495_v7 = vpop.f32.mrf.mxu3  ;;  %vm1914_vm4 = vmor %vm1912_vm3, %vm1913_vm2  ;;  %v1931_v36 = vand.u32 2147483647, %v1876_v10  ;;  %v1933_v22 = vand.u32 2147483648, %v1876_v10  ;;  %vm1927_vm7 = vweird.f32 %v1876_v10 }
 0x42e   :  { %v1909_v40 = vsub.f32 1.0, %v1908_v19  ;;  %v1496_v20 = vadd.f32 %v4188_v48, %v1495_v7 }
 0x42f   :  { %v1692_v13 = vpop.f32.mrf.mxu0  ;;  %v1934_v23 = vor.u32 1.1754944e-38, %v1933_v22  ;;  %vm1932_vm9 = vcmp.eq.f32.partialorder %v1931_v36, 8.507059e+37 }
 0x430   :  { %v1910_v26 = vmul.f32 %v2926_v1, %v1909_v40  ;;  %v1553_v30 = vmax.f32 %v1496_v20, 0.0  ;;  %v1693_v63 = vadd.f32 %v4270_v2, %v1692_v13 }
 0x432   :  { %v2928_v11 = vpop.eup %2927  ;;  %v1911_v16 = vadd.f32 %v2926_v1, %v1910_v26  ;;  %v2818_v43 = vmul.f32 -1.442695, %v1693_v63  ;;  %2802 = vmatmul.msk.f32.gmra.mxu0 %vm56_vm0, %v1553_v30 }
 0x433   :  { %v2930_v39 = vpop.eup %2929  ;;  %v1877_v45 = vadd.f32 1.0, %v2928_v11 }
 0x434   :  { %v1915_v27 = vsel %vm1914_vm4, %v2926_v1, %v1911_v16  ;;  %v1923_v35 = vmul.f32 %v2930_v39, %v1876_v10  ;;  %2931 = vpow2.f32 %v2818_v43  ;;  %vm1928_vm6 = vweird.f32 %v2930_v39 }
 0x435   :  { %v1920_v58 = vsel %vm1917_vm5, %v1919_v44, %v1915_v27  ;;  %2933 = vrcp.f32 %v1877_v45  ;;  %v1498_v49 = vpop.f32.mrf.mxu3  ;;  %vm1929_vm8 = vmor %vm1927_vm7, %vm1928_vm6  ;;  %v1946_v14 = vand.u32 2147483647, %v1877_v45  ;;  %v1948_v46 = vand.u32 2147483648, %v1877_v45 }
 0x436   :  { %2387 = vst.msk [vmem:[%s4475_s4] sm:$0xff] %vm56_vm0, %v1920_v58  ;;  %v1924_v51 = vsub.f32 1.0, %v1923_v35  ;;  %v1499_v37 = vadd.f32 %v4188_v48, %v1498_v49  ;;  %vm1942_vm11 = vweird.f32 %v1877_v45 }
 0x437   :  { %v1695_v62 = vpop.f32.mrf.mxu0  ;;  %v1949_v41 = vor.u32 1.1754944e-38, %v1948_v46  ;;  %vm1947_vm13 = vcmp.eq.f32.partialorder %v1946_v14, 8.507059e+37 }
 0x438   :  { %v1925_v56 = vmul.f32 %v2930_v39, %v1924_v51  ;;  %v1554_v29 = vmax.f32 %v1499_v37, 0.0  ;;  %v1696_v57 = vadd.f32 %v4270_v2, %v1695_v62 }
 0x43a   :  { %v2932_v28 = vpop.eup %2931  ;;  %v1926_v59 = vadd.f32 %v2930_v39, %v1925_v56  ;;  %v2819_v21 = vmul.f32 -1.442695, %v1696_v57  ;;  %2803 = vmatmul.msk.f32.gmra.mxu0 %vm56_vm0, %v1554_v29 }
 0x43b   :  { %v2934_v24 = vpop.eup %2933  ;;  %v1878_v18 = vadd.f32 1.0, %v2932_v28 }
 0x43c   :  { %v1930_v61 = vsel %vm1929_vm8, %v2930_v39, %v1926_v59  ;;  %v1938_v33 = vmul.f32 %v2934_v24, %v1877_v45  ;;  %2935 = vpow2.f32 %v2819_v21  ;;  %vm1943_vm10 = vweird.f32 %v2934_v24 }
 0x43d   :  { %v1935_v47 = vsel %vm1932_vm9, %v1934_v23, %v1930_v61  ;;  %2937 = vrcp.f32 %v1878_v18  ;;  %v1501_v6 = vpop.f32.mrf.mxu3  ;;  %vm1944_vm12 = vmor %vm1942_vm11, %vm1943_vm10  ;;  %v1961_v50 = vand.u32 2147483647, %v1878_v18  ;;  %v1963_v34 = vand.u32 2147483648, %v1878_v18 }
 0x43e   :  { %2388 = vst.msk [vmem:[%s4475_s4 + $0x8] sm:$0xff] %vm56_vm0, %v1935_v47  ;;  %v1939_v55 = vsub.f32 1.0, %v1938_v33  ;;  %v1502_v25 = vadd.f32 %v4188_v48, %v1501_v6  ;;  %vm1957_vm15 = vweird.f32 %v1878_v18 }
 0x43f   :  { %v1698_v0 = vpop.f32.mrf.mxu0  ;;  %v1964_v13 = vor.u32 1.1754944e-38, %v1963_v34  ;;  %vm1962_vm2 = vcmp.eq.f32.partialorder %v1961_v50, 8.507059e+37 }
 0x440   :  { %v1940_v17 = vmul.f32 %v2934_v24, %v1939_v55  ;;  %v1555_v32 = vmax.f32 %v1502_v25, 0.0  ;;  %v1699_v54 = vadd.f32 %v4270_v2, %v1698_v0 }
 0x442   :  { %v2936_v3 = vpop.eup %2935  ;;  %v1941_v5 = vadd.f32 %v2934_v24, %v1940_v17  ;;  %v2820_v52 = vmul.f32 -1.442695, %v1699_v54  ;;  %2804 = vmatmul.msk.f32.gmra.mxu0 %vm56_vm0, %v1555_v32 }
 0x443   :  { %v2938_v8 = vpop.eup %2937  ;;  %v1879_v60 = vadd.f32 1.0, %v2936_v3 }
 0x444   :  { %v1945_v4 = vsel %vm1944_vm12, %v2934_v24, %v1941_v5  ;;  %v1953_v42 = vmul.f32 %v2938_v8, %v1878_v18  ;;  %2939 = vpow2.f32 %v2820_v52  ;;  %vm1958_vm14 = vweird.f32 %v2938_v8 }
 0x445   :  { %v1950_v12 = vsel %vm1947_vm13, %v1949_v41, %v1945_v4  ;;  %2941 = vrcp.f32 %v1879_v60  ;;  %v1504_v15 = vpop.f32.mrf.mxu3  ;;  %vm1959_vm1 = vmor %vm1957_vm15, %vm1958_vm14  ;;  %v1976_v44 = vand.u32 2147483647, %v1879_v60  ;;  %v1978_v45 = vand.u32 2147483648, %v1879_v60 }
 0x446   :  { %2389 = vst.msk [vmem:[%s4475_s4 + $0x10] sm:$0xff] %vm56_vm0, %v1950_v12  ;;  %v1954_v31 = vsub.f32 1.0, %v1953_v42  ;;  %v1505_v53 = vadd.f32 %v4188_v48, %v1504_v15  ;;  %vm1972_vm4 = vweird.f32 %v1879_v60 }
 0x447   :  { %v1701_v1 = vpop.f32.mrf.mxu0  ;;  %v1979_v62 = vor.u32 1.1754944e-38, %v1978_v45  ;;  %vm1977_vm6 = vcmp.eq.f32.partialorder %v1976_v44, 8.507059e+37 }
 0x448   :  { %v1955_v10 = vmul.f32 %v2938_v8, %v1954_v31  ;;  %v1556_v19 = vmax.f32 %v1505_v53, 0.0  ;;  %v1702_v7 = vadd.f32 %v4270_v2, %v1701_v1 }
 0x44a   :  { %v2940_v40 = vpop.eup %2939  ;;  %v1956_v20 = vadd.f32 %v2938_v8, %v1955_v10  ;;  %v2821_v38 = vmul.f32 -1.442695, %v1702_v7  ;;  %2805 = vmatmul.msk.f32.gmra.mxu0 %vm56_vm0, %v1556_v19 }
 0x44b   :  { %v2942_v9 = vpop.eup %2941  ;;  %v1880_v26 = vadd.f32 1.0, %v2940_v40 }
 0x44c   :  { %v1960_v30 = vsel %vm1959_vm1, %v2938_v8, %v1956_v20  ;;  %v1968_v63 = vmul.f32 %v2942_v9, %v1879_v60  ;;  %2943 = vpow2.f32 %v2821_v38  ;;  %vm1973_vm3 = vweird.f32 %v2942_v9 }
 0x44d   :  { %v1965_v11 = vsel %vm1962_vm2, %v1964_v13, %v1960_v30  ;;  %2945 = vrcp.f32 %v1880_v26  ;;  %v1507_v16 = vpop.f32.mrf.mxu3  ;;  %vm1974_vm5 = vmor %vm1972_vm4, %vm1973_vm3  ;;  %v1991_v23 = vand.u32 2147483647, %v1880_v26  ;;  %v1993_v18 = vand.u32 2147483648, %v1880_v26 }
 0x44e   :  { %2390 = vst.msk [vmem:[%s4475_s4 + $0x18] sm:$0xff] %vm56_vm0, %v1965_v11  ;;  %v1969_v43 = vsub.f32 1.0, %v1968_v63  ;;  %v1508_v39 = vadd.f32 %v4188_v48, %v1507_v16  ;;  %vm1987_vm8 = vweird.f32 %v1880_v26 }
 0x44f   :  { %v1704_v27 = vpop.f32.mrf.mxu0  ;;  %v1994_v0 = vor.u32 1.1754944e-38, %v1993_v18  ;;  %vm1992_vm10 = vcmp.eq.f32.partialorder %v1991_v23, 8.507059e+37 }
 0x450   :  { %v1970_v35 = vmul.f32 %v2942_v9, %v1969_v43  ;;  %v1557_v58 = vmax.f32 %v1508_v39, 0.0  ;;  %v1705_v49 = vadd.f32 %v4270_v2, %v1704_v27 }
 0x452   :  { %v2944_v51 = vpop.eup %2943  ;;  %v1971_v37 = vadd.f32 %v2942_v9, %v1970_v35  ;;  %v2822_v36 = vmul.f32 -1.442695, %v1705_v49  ;;  %2806 = vmatmul.msk.f32.gmra.mxu0 %vm56_vm0, %v1557_v58 }
 0x453   :  { %v2946_v22 = vpop.eup %2945  ;;  %v1881_v56 = vadd.f32 1.0, %v2944_v51 }
 0x454   :  { %v1975_v29 = vsel %vm1974_vm5, %v2942_v9, %v1971_v37  ;;  %v1983_v57 = vmul.f32 %v2946_v22, %v1880_v26  ;;  %2947 = vpow2.f32 %v2822_v36  ;;  %vm1988_vm7 = vweird.f32 %v2946_v22 }
 0x455   :  { %v1980_v28 = vsel %vm1977_vm6, %v1979_v62, %v1975_v29  ;;  %2949 = vrcp.f32 %v1881_v56  ;;  %v1510_v59 = vpop.f32.mrf.mxu3  ;;  %vm1989_vm9 = vmor %vm1987_vm8, %vm1988_vm7  ;;  %v2006_v41 = vand.u32 2147483647, %v1881_v56  ;;  %v2008_v60 = vand.u32 2147483648, %v1881_v56 }
 0x456   :  { %2391 = vst.msk [vmem:[%s4475_s4 + $0x20] sm:$0xff] %vm56_vm0, %v1980_v28  ;;  %v1984_v21 = vsub.f32 1.0, %v1983_v57  ;;  %v1511_v24 = vadd.f32 %v4188_v48, %v1510_v59  ;;  %vm2002_vm12 = vweird.f32 %v1881_v56 }
 0x457   :  { %v1707_v61 = vpop.f32.mrf.mxu0  ;;  %v2009_v1 = vor.u32 1.1754944e-38, %v2008_v60  ;;  %vm2007_vm14 = vcmp.eq.f32.partialorder %v2006_v41, 8.507059e+37 }
 0x458   :  { %v1985_v33 = vmul.f32 %v2946_v22, %v1984_v21  ;;  %v1558_v47 = vmax.f32 %v1511_v24, 0.0  ;;  %v1708_v6 = vadd.f32 %v4270_v2, %v1707_v61 }
 0x45a   :  { %v2948_v55 = vpop.eup %2947  ;;  %v1986_v25 = vadd.f32 %v2946_v22, %v1985_v33  ;;  %v2823_v14 = vmul.f32 -1.442695, %v1708_v6  ;;  %2807 = vmatmul.msk.f32.gmra.mxu0 %vm56_vm0, %v1558_v47 }
 0x45b   :  { %v2950_v46 = vpop.eup %2949  ;;  %v1882_v17 = vadd.f32 1.0, %v2948_v55 }
 0x45c   :  { %v1990_v32 = vsel %vm1989_vm9, %v2946_v22, %v1986_v25  ;;  %v1998_v54 = vmul.f32 %v2950_v46, %v1881_v56  ;;  %2951 = vpow2.f32 %v2823_v14  ;;  %vm2003_vm11 = vweird.f32 %v2950_v46 }
 0x45d   :  { %v1995_v3 = vsel %vm1992_vm10, %v1994_v0, %v1990_v32  ;;  %2953 = vrcp.f32 %v1882_v17  ;;  %v1513_v5 = vpop.f32.mrf.mxu3  ;;  %vm2004_vm13 = vmor %vm2002_vm12, %vm2003_vm11  ;;  %v2021_v13 = vand.u32 2147483647, %v1882_v17  ;;  %v2023_v26 = vand.u32 2147483648, %v1882_v17 }
 0x45e   :  { %2392 = vst.msk [vmem:[%s4475_s4 + $0x28] sm:$0xff] %vm56_vm0, %v1995_v3  ;;  %v1999_v52 = vsub.f32 1.0, %v1998_v54  ;;  %v1514_v8 = vadd.f32 %v4188_v48, %v1513_v5  ;;  %vm2017_vm1 = vweird.f32 %v1882_v17 }
 0x45f   :  { %v1710_v4 = vpop.f32.mrf.mxu0  ;;  %v2024_v27 = vor.u32 1.1754944e-38, %v2023_v26  ;;  %vm2022_vm3 = vcmp.eq.f32.partialorder %v2021_v13, 8.507059e+37 }
 0x460   :  { %v2000_v42 = vmul.f32 %v2950_v46, %v1999_v52  ;;  %v1559_v12 = vmax.f32 %v1514_v8, 0.0  ;;  %v1711_v15 = vadd.f32 %v4270_v2, %v1710_v4 }
 0x462   :  { %v2952_v31 = vpop.eup %2951  ;;  %v2001_v53 = vadd.f32 %v2950_v46, %v2000_v42  ;;  %v2824_v50 = vmul.f32 -1.442695, %v1711_v15  ;;  %2808 = vmatmul.msk.f32.gmra.mxu0 %vm56_vm0, %v1559_v12 }
 0x463   :  { %v2954_v34 = vpop.eup %2953  ;;  %v1883_v10 = vadd.f32 1.0, %v2952_v31 }
 0x464   :  { %v2005_v19 = vsel %vm2004_vm13, %v2950_v46, %v2001_v53  ;;  %v2013_v7 = vmul.f32 %v2954_v34, %v1882_v17  ;;  %2955 = vpow2.f32 %v2824_v50  ;;  %vm2018_vm15 = vweird.f32 %v2954_v34 }
 0x465   :  { %v2010_v40 = vsel %vm2007_vm14, %v2009_v1, %v2005_v19  ;;  %2957 = vrcp.f32 %v1883_v10  ;;  %v1516_v20 = vpop.f32.mrf.mxu3  ;;  %vm2019_vm2 = vmor %vm2017_vm1, %vm2018_vm15  ;;  %v2036_v62 = vand.u32 2147483647, %v1883_v10  ;;  %v2038_v56 = vand.u32 2147483648, %v1883_v10 }
 0x466   :  { %2393 = vst.msk [vmem:[%s4475_s4 + $0x30] sm:$0xff] %vm56_vm0, %v2010_v40  ;;  %v2014_v38 = vsub.f32 1.0, %v2013_v7  ;;  %v1517_v9 = vadd.f32 %v4188_v48, %v1516_v20  ;;  %vm2032_vm5 = vweird.f32 %v1883_v10 }
 0x467   :  { %v1713_v30 = vpop.f32.mrf.mxu0  ;;  %v2039_v61 = vor.u32 1.1754944e-38, %v2038_v56  ;;  %vm2037_vm7 = vcmp.eq.f32.partialorder %v2036_v62, 8.507059e+37 }
 0x468   :  { %v2015_v63 = vmul.f32 %v2954_v34, %v2014_v38  ;;  %v1560_v11 = vmax.f32 %v1517_v9, 0.0  ;;  %v1714_v16 = vadd.f32 %v4270_v2, %v1713_v30 }
 0x46a   :  { %v2956_v43 = vpop.eup %2955  ;;  %v2016_v39 = vadd.f32 %v2954_v34, %v2015_v63  ;;  %v2825_v44 = vmul.f32 -1.442695, %v1714_v16  ;;  %2809 = vmatmul.msk.f32.gmra.mxu0 %vm56_vm0, %v1560_v11 }
 0x46b   :  { %v2958_v45 = vpop.eup %2957  ;;  %v1884_v35 = vadd.f32 1.0, %v2956_v43 }
 0x46c   :  { %v2020_v58 = vsel %vm2019_vm2, %v2954_v34, %v2016_v39  ;;  %v2028_v49 = vmul.f32 %v2958_v45, %v1883_v10  ;;  %2959 = vpow2.f32 %v2825_v44  ;;  %vm2033_vm4 = vweird.f32 %v2958_v45 }
 0x46d   :  { %v2025_v51 = vsel %vm2022_vm3, %v2024_v27, %v2020_v58  ;;  %2961 = vrcp.f32 %v1884_v35  ;;  %v1519_v37 = vpop.f32.mrf.mxu3  ;;  %vm2034_vm6 = vmor %vm2032_vm5, %vm2033_vm4  ;;  %v2051_v0 = vand.u32 2147483647, %v1884_v35  ;;  %v2053_v17 = vand.u32 2147483648, %v1884_v35 }
 0x46e   :  { %2394 = vst.msk [vmem:[%s4475_s4 + $0x38] sm:$0xff] %vm56_vm0, %v2025_v51  ;;  %v2029_v36 = vsub.f32 1.0, %v2028_v49  ;;  %v1520_v22 = vadd.f32 %v4188_v48, %v1519_v37  ;;  %vm2047_vm9 = vweird.f32 %v1884_v35 }
 0x46f   :  { %v1716_v29 = vpop.f32.mrf.mxu0  ;;  %v2054_v4 = vor.u32 1.1754944e-38, %v2053_v17  ;;  %vm2052_vm11 = vcmp.eq.f32.partialorder %v2051_v0, 8.507059e+37 }
 0x470   :  { %v2030_v57 = vmul.f32 %v2958_v45, %v2029_v36  ;;  %v1561_v28 = vmax.f32 %v1520_v22, 0.0  ;;  %v1717_v59 = vadd.f32 %v4270_v2, %v1716_v29 }
 0x472   :  { %v2960_v21 = vpop.eup %2959  ;;  %v2031_v24 = vadd.f32 %v2958_v45, %v2030_v57  ;;  %v2826_v23 = vmul.f32 -1.442695, %v1717_v59  ;;  %2810 = vmatmul.msk.f32.gmra.mxu0 %vm56_vm0, %v1561_v28 }
 0x473   :  { %v2962_v18 = vpop.eup %2961  ;;  %v1885_v33 = vadd.f32 1.0, %v2960_v21 }
 0x474   :  { %v2035_v47 = vsel %vm2034_vm6, %v2958_v45, %v2031_v24  ;;  %v2043_v6 = vmul.f32 %v2962_v18, %v1884_v35  ;;  %2963 = vpow2.f32 %v2826_v23  ;;  %vm2048_vm8 = vweird.f32 %v2962_v18 }
 0x475   :  { %v2040_v55 = vsel %vm2037_vm7, %v2039_v61, %v2035_v47  ;;  %2965 = vrcp.f32 %v1885_v33  ;;  %v1522_v25 = vpop.f32.mrf.mxu3  ;;  %vm2049_vm10 = vmor %vm2047_vm9, %vm2048_vm8  ;;  %v2066_v1 = vand.u32 2147483647, %v1885_v33  ;;  %v2068_v10 = vand.u32 2147483648, %v1885_v33 }
 0x476   :  { %2395 = vst.msk [vmem:[%s4475_s4 + $0x40] sm:$0xff] %vm56_vm0, %v2040_v55  ;;  %v2044_v14 = vsub.f32 1.0, %v2043_v6  ;;  %v1523_v46 = vadd.f32 %v4188_v48, %v1522_v25  ;;  %vm2062_vm13 = vweird.f32 %v1885_v33 }
 0x477   :  { %v1719_v32 = vpop.f32.mrf.mxu0  ;;  %v2069_v30 = vor.u32 1.1754944e-38, %v2068_v10  ;;  %vm2067_vm15 = vcmp.eq.f32.partialorder %v2066_v1, 8.507059e+37 }
 0x478   :  { %v2045_v54 = vmul.f32 %v2962_v18, %v2044_v14  ;;  %v1562_v3 = vmax.f32 %v1523_v46, 0.0  ;;  %v1720_v5 = vadd.f32 %v4270_v2, %v1719_v32 }
 0x47a   :  { %v2964_v52 = vpop.eup %2963  ;;  %v2046_v8 = vadd.f32 %v2962_v18, %v2045_v54  ;;  %v2827_v41 = vmul.f32 -1.442695, %v1720_v5  ;;  %2811 = vmatmul.msk.f32.gmra.mxu0 %vm56_vm0, %v1562_v3 }
 0x47b   :  { %v2966_v60 = vpop.eup %2965  ;;  %v1886_v42 = vadd.f32 1.0, %v2964_v52 }
 0x47c   :  { %v2050_v12 = vsel %vm2049_vm10, %v2962_v18, %v2046_v8  ;;  %v2058_v15 = vmul.f32 %v2966_v60, %v1885_v33  ;;  %2967 = vpow2.f32 %v2827_v41  ;;  %vm2063_vm12 = vweird.f32 %v2966_v60 }
 0x47d   :  { %v2055_v31 = vsel %vm2052_vm11, %v2054_v4, %v2050_v12  ;;  %2969 = vrcp.f32 %v1886_v42  ;;  %v1525_v53 = vpop.f32.mrf.mxu3  ;;  %vm2064_vm14 = vmor %vm2062_vm13, %vm2063_vm12  ;;  %v2081_v27 = vand.u32 2147483647, %v1886_v42  ;;  %v2083_v35 = vand.u32 2147483648, %v1886_v42 }
 0x47e   :  { %2396 = vst.msk [vmem:[%s4475_s4 + $0x48] sm:$0xff] %vm56_vm0, %v2055_v31  ;;  %v2059_v50 = vsub.f32 1.0, %v2058_v15  ;;  %v1526_v34 = vadd.f32 %v4188_v48, %v1525_v53  ;;  %vm2077_vm2 = vweird.f32 %v1886_v42 }
 0x47f   :  { %v1722_v19 = vpop.f32.mrf.mxu0  ;;  %v2084_v29 = vor.u32 1.1754944e-38, %v2083_v35  ;;  %vm2082_vm4 = vcmp.eq.f32.partialorder %v2081_v27, 8.507059e+37 }
 0x480   :  { %v2060_v7 = vmul.f32 %v2966_v60, %v2059_v50  ;;  %v1563_v40 = vmax.f32 %v1526_v34, 0.0  ;;  %v1723_v20 = vadd.f32 %v4270_v2, %v1722_v19 }
 0x482   :  { %v2968_v38 = vpop.eup %2967  ;;  %v2061_v9 = vadd.f32 %v2966_v60, %v2060_v7  ;;  %v2828_v13 = vmul.f32 -1.442695, %v1723_v20  ;;  %2812 = vmatmul.msk.f32.gmra.mxu0 %vm56_vm0, %v1563_v40 }
 0x483   :  { %v2970_v26 = vpop.eup %2969  ;;  %v1887_v63 = vadd.f32 1.0, %v2968_v38 }
 0x484   :  { %v2065_v11 = vsel %vm2064_vm14, %v2966_v60, %v2061_v9  ;;  %v2073_v16 = vmul.f32 %v2970_v26, %v1886_v42  ;;  %2971 = vpow2.f32 %v2828_v13  ;;  %vm2078_vm1 = vweird.f32 %v2970_v26 }
 0x485   :  { %v2070_v43 = vsel %vm2067_vm15, %v2069_v30, %v2065_v11  ;;  %2973 = vrcp.f32 %v1887_v63  ;;  %v1528_v39 = vpop.f32.mrf.mxu3  ;;  %vm2079_vm3 = vmor %vm2077_vm2, %vm2078_vm1  ;;  %v2096_v61 = vand.u32 2147483647, %v1887_v63  ;;  %v2098_v33 = vand.u32 2147483648, %v1887_v63 }
 0x486   :  { %2397 = vst.msk [vmem:[%s4475_s4 + $0x50] sm:$0xff] %vm56_vm0, %v2070_v43  ;;  %v2074_v44 = vsub.f32 1.0, %v2073_v16  ;;  %v1529_v45 = vadd.f32 %v4188_v48, %v1528_v39  ;;  %vm2092_vm6 = vweird.f32 %v1887_v63 }
 0x487   :  { %v1725_v58 = vpop.f32.mrf.mxu0  ;;  %v2099_v32 = vor.u32 1.1754944e-38, %v2098_v33  ;;  %vm2097_vm8 = vcmp.eq.f32.partialorder %v2096_v61, 8.507059e+37 }
 0x488   :  { %v2075_v49 = vmul.f32 %v2970_v26, %v2074_v44  ;;  %v1564_v51 = vmax.f32 %v1529_v45, 0.0  ;;  %v1726_v37 = vadd.f32 %v4270_v2, %v1725_v58 }
 0x48a   :  { %v2972_v36 = vpop.eup %2971  ;;  %v2076_v22 = vadd.f32 %v2970_v26, %v2075_v49  ;;  %v2829_v62 = vmul.f32 -1.442695, %v1726_v37  ;;  %2813 = vmatmul.msk.f32.gmra.mxu0 %vm56_vm0, %v1564_v51 }
 0x48b   :  { %v2974_v56 = vpop.eup %2973  ;;  %v1888_v57 = vadd.f32 1.0, %v2972_v36 }
 0x48c   :  { %v2080_v28 = vsel %vm2079_vm3, %v2970_v26, %v2076_v22  ;;  %v2088_v59 = vmul.f32 %v2974_v56, %v1887_v63  ;;  %2975 = vpow2.f32 %v2829_v62  ;;  %vm2093_vm5 = vweird.f32 %v2974_v56 }
 0x48d   :  { %v2085_v21 = vsel %vm2082_vm4, %v2084_v29, %v2080_v28  ;;  %2977 = vrcp.f32 %v1888_v57  ;;  %v1531_v24 = vpop.f32.mrf.mxu3  ;;  %vm2094_vm7 = vmor %vm2092_vm6, %vm2093_vm5  ;;  %v2113_v8 = vand.u32 2147483648, %v1888_v57  ;;  %v2111_v4 = vand.u32 2147483647, %v1888_v57 }
 0x48e   :  { %2398 = vst.msk [vmem:[%s4475_s4 + $0x58] sm:$0xff] %vm56_vm0, %v2085_v21  ;;  %v2089_v23 = vsub.f32 1.0, %v2088_v59  ;;  %v1532_v18 = vadd.f32 %v4188_v48, %v1531_v24  ;;  %vm2107_vm10 = vweird.f32 %v1888_v57 }
 0x48f   :  { %v1728_v47 = vpop.f32.mrf.mxu0  ;;  %v2114_v50 = vor.u32 1.1754944e-38, %v2113_v8  ;;  %vm2112_vm12 = vcmp.eq.f32.partialorder %v2111_v4, 8.507059e+37 }
 0x490   :  { %v2090_v6 = vmul.f32 %v2974_v56, %v2089_v23  ;;  %v1565_v55 = vmax.f32 %v1532_v18, 0.0  ;;  %v1729_v25 = vadd.f32 %v4270_v2, %v1728_v47 }
 0x492   :  { %v2976_v14 = vpop.eup %2975  ;;  %v2091_v46 = vadd.f32 %v2974_v56, %v2090_v6  ;;  %v2830_v0 = vmul.f32 -1.442695, %v1729_v25  ;;  %2814 = vmatmul.msk.f32.gmra.mxu0 %vm56_vm0, %v1565_v55 }
 0x493   :  { %v2978_v17 = vpop.eup %2977  ;;  %v1889_v54 = vadd.f32 1.0, %v2976_v14 }
 0x494   :  { %v2095_v3 = vsel %vm2094_vm7, %v2974_v56, %v2091_v46  ;;  %v2103_v48 = vmul.f32 %v2978_v17, %v1888_v57  ;;  %2979 = vpow2.f32 %v2830_v0  ;;  %vm2108_vm9 = vweird.f32 %v2978_v17 }
 0x495   :  { %v2100_v5 = vsel %vm2097_vm8, %v2099_v32, %v2095_v3  ;;  %2981 = vrcp.f32 %v1889_v54  ;;  %vm2109_vm11 = vmor %vm2107_vm10, %vm2108_vm9  ;;  %v2128_v40 = vand.u32 2147483648, %v1889_v54  ;;  %v2126_v9 = vand.u32 2147483647, %v1889_v54 }
 0x496   :  { %2399 = vst.msk [vmem:[%s4475_s4 + $0x60] sm:$0xff] %vm56_vm0, %v2100_v5  ;;  %v2104_v52 = vsub.f32 1.0, %v2103_v48  ;;  %vm2122_vm14 = vweird.f32 %v1889_v54 }
 0x497   :  { %v1731_v41 = vpop.f32.mrf.mxu0  ;;  %v2129_v16 = vor.u32 1.1754944e-38, %v2128_v40  ;;  %vm2127_vm1 = vcmp.eq.f32.partialorder %v2126_v9, 8.507059e+37 }
 0x498   :  { %v2105_v60 = vmul.f32 %v2978_v17, %v2104_v52  ;;  %v1732_v42 = vadd.f32 %v4270_v2, %v1731_v41 }
 0x49a   :  { %v2980_v12 = vpop.eup %2979  ;;  %v2106_v15 = vadd.f32 %v2978_v17, %v2105_v60  ;;  %v2831_v31 = vmul.f32 -1.442695, %v1732_v42 }
 0x49b   :  { %v2982_v53 = vpop.eup %2981  ;;  %v1890_v34 = vadd.f32 1.0, %v2980_v12 }
 0x49c   :  { %v2110_v1 = vsel %vm2109_vm11, %v2978_v17, %v2106_v15  ;;  %v2118_v10 = vmul.f32 %v2982_v53, %v1889_v54  ;;  %2983 = vpow2.f32 %v2831_v31  ;;  %vm2123_vm13 = vweird.f32 %v2982_v53 }
 0x49d   :  { %v2115_v19 = vsel %vm2112_vm12, %v2114_v50, %v2110_v1  ;;  %2985 = vrcp.f32 %v1890_v34  ;;  %vm2124_vm15 = vmor %vm2122_vm14, %vm2123_vm13  ;;  %v2143_v35 = vand.u32 2147483648, %v1890_v34  ;;  %v2141_v51 = vand.u32 2147483647, %v1890_v34 }
 0x49e   :  { %2400 = vst.msk [vmem:[%s4475_s4 + $0x68] sm:$0xff] %vm56_vm0, %v2115_v19  ;;  %v2119_v7 = vsub.f32 1.0, %v2118_v10  ;;  %vm2137_vm3 = vweird.f32 %v1890_v34 }
 0x49f   :  { %v1734_v20 = vpop.f32.mrf.mxu0  ;;  %v2144_v29 = vor.u32 1.1754944e-38, %v2143_v35  ;;  %vm2142_vm5 = vcmp.eq.f32.partialorder %v2141_v51, 8.507059e+37 }
 0x4a0   :  { %v2120_v38 = vmul.f32 %v2982_v53, %v2119_v7  ;;  %v1735_v13 = vadd.f32 %v4270_v2, %v1734_v20 }
 0x4a2   :  { %v2984_v26 = vpop.eup %2983  ;;  %v2121_v30 = vadd.f32 %v2982_v53, %v2120_v38  ;;  %v2832_v63 = vmul.f32 -1.442695, %v1735_v13 }
 0x4a3   :  { %v2986_v11 = vpop.eup %2985  ;;  %v1891_v43 = vadd.f32 1.0, %v2984_v26 }
 0x4a4   :  { %v2125_v39 = vsel %vm2124_vm15, %v2982_v53, %v2121_v30  ;;  %v2133_v44 = vmul.f32 %v2986_v11, %v1890_v34  ;;  %2987 = vpow2.f32 %v2832_v63  ;;  %vm2138_vm2 = vweird.f32 %v2986_v11 }
 0x4a5   :  { %v2130_v45 = vsel %vm2127_vm1, %v2129_v16, %v2125_v39  ;;  %2989 = vrcp.f32 %v1891_v43  ;;  %vm2139_vm4 = vmor %vm2137_vm3, %vm2138_vm2  ;;  %v2158_v23 = vand.u32 2147483648, %v1891_v43  ;;  %v2156_v33 = vand.u32 2147483647, %v1891_v43 }
 0x4a6   :  { %2401 = vst.msk [vmem:[%s4475_s4 + $0x70] sm:$0xff] %vm56_vm0, %v2130_v45  ;;  %v2134_v27 = vsub.f32 1.0, %v2133_v44  ;;  %vm2152_vm7 = vweird.f32 %v1891_v43 }
 0x4a7   :  { %v1737_v58 = vpop.f32.mrf.mxu0  ;;  %v2159_v46 = vor.u32 1.1754944e-38, %v2158_v23  ;;  %vm2157_vm9 = vcmp.eq.f32.partialorder %v2156_v33, 8.507059e+37  ;;  %v4410_v23 = vld [vmem:[%s4471_s3 + $0x5] ss:$0 sm:$0xff] }
 0x4a8   :  { %v2135_v49 = vmul.f32 %v2986_v11, %v2134_v27  ;;  %v1738_v37 = vadd.f32 %v4270_v2, %v1737_v58 }
 0x4aa   :  { %v2988_v36 = vpop.eup %2987  ;;  %v2136_v22 = vadd.f32 %v2986_v11, %v2135_v49  ;;  %v2833_v62 = vmul.f32 -1.442695, %v1738_v37 }
 0x4ab   :  { %v2990_v56 = vpop.eup %2989  ;;  %v1892_v57 = vadd.f32 1.0, %v2988_v36 }
 0x4ac   :  { %v2140_v28 = vsel %vm2139_vm4, %v2986_v11, %v2136_v22  ;;  %v2148_v59 = vmul.f32 %v2990_v56, %v1891_v43  ;;  %2991 = vpow2.f32 %v2833_v62  ;;  %vm2153_vm6 = vweird.f32 %v2990_v56 }
 0x4ad   :  { %v2145_v21 = vsel %vm2142_vm5, %v2144_v29, %v2140_v28  ;;  %2993 = vrcp.f32 %v1892_v57  ;;  %vm2154_vm8 = vmor %vm2152_vm7, %vm2153_vm6  ;;  %v2173_v48 = vand.u32 2147483648, %v1892_v57  ;;  %v2171_v8 = vand.u32 2147483647, %v1892_v57 }
 0x4ae   :  { %2402 = vst.msk [vmem:[%s4475_s4 + $0x78] sm:$0xff] %vm56_vm0, %v2145_v21  ;;  %v2149_v24 = vsub.f32 1.0, %v2148_v59  ;;  %vm2167_vm11 = vweird.f32 %v1892_v57 }
 0x4af   :  { %v1740_v18 = vpop.f32.mrf.mxu0  ;;  %v2174_v15 = vor.u32 1.1754944e-38, %v2173_v48  ;;  %vm2172_vm13 = vcmp.eq.f32.partialorder %v2171_v8, 8.507059e+37 }
 0x4b0   :  { %v2150_v61 = vmul.f32 %v2990_v56, %v2149_v24  ;;  %v1741_v47 = vadd.f32 %v4270_v2, %v1740_v18 }
 0x4b2   :  { %v2992_v6 = vpop.eup %2991  ;;  %v2151_v55 = vadd.f32 %v2990_v56, %v2150_v61  ;;  %v2834_v25 = vmul.f32 -1.442695, %v1741_v47 }
 0x4b3   :  { %v2994_v14 = vpop.eup %2993  ;;  %v1893_v0 = vadd.f32 1.0, %v2992_v6 }
 0x4b4   :  { %v2155_v17 = vsel %vm2154_vm8, %v2990_v56, %v2151_v55  ;;  %v2163_v32 = vmul.f32 %v2994_v14, %v1892_v57  ;;  %2995 = vpow2.f32 %v2834_v25  ;;  %vm2168_vm10 = vweird.f32 %v2994_v14 }
 0x4b5   :  { %v2160_v54 = vsel %vm2157_vm9, %v2159_v46, %v2155_v17  ;;  %2997 = vrcp.f32 %v1893_v0  ;;  %vm2169_vm12 = vmor %vm2167_vm11, %vm2168_vm10  ;;  %v2188_v10 = vand.u32 2147483648, %v1893_v0  ;;  %v2186_v40 = vand.u32 2147483647, %v1893_v0 }
 0x4b6   :  { %2403 = vst.msk [vmem:[%s4475_s4 + $0x80] sm:$0xff] %vm56_vm0, %v2160_v54  ;;  %v2164_v3 = vsub.f32 1.0, %v2163_v32  ;;  %vm2182_vm15 = vweird.f32 %v1893_v0 }
 0x4b7   :  { %v1743_v5 = vpop.f32.mrf.mxu0  ;;  %v2189_v30 = vor.u32 1.1754944e-38, %v2188_v10  ;;  %vm2187_vm2 = vcmp.eq.f32.partialorder %v2186_v40, 8.507059e+37 }
 0x4b8   :  { %v2165_v52 = vmul.f32 %v2994_v14, %v2164_v3  ;;  %v1744_v41 = vadd.f32 %v4270_v2, %v1743_v5 }
 0x4ba   :  { %v2996_v60 = vpop.eup %2995  ;;  %v2166_v4 = vadd.f32 %v2994_v14, %v2165_v52  ;;  %v2835_v42 = vmul.f32 -1.442695, %v1744_v41 }
 0x4bb   :  { %v2998_v12 = vpop.eup %2997  ;;  %v1894_v31 = vadd.f32 1.0, %v2996_v60 }
 0x4bc   :  { %v2170_v53 = vsel %vm2169_vm12, %v2994_v14, %v2166_v4  ;;  %v2178_v50 = vmul.f32 %v2998_v12, %v1893_v0  ;;  %2999 = vpow2.f32 %v2835_v42  ;;  %vm2183_vm14 = vweird.f32 %v2998_v12 }
 0x4bd   :  { %v2175_v34 = vsel %vm2172_vm13, %v2174_v15, %v2170_v53  ;;  %3001 = vrcp.f32 %v1894_v31  ;;  %vm2184_vm1 = vmor %vm2182_vm15, %vm2183_vm14  ;;  %v2203_v44 = vand.u32 2147483648, %v1894_v31  ;;  %v2201_v35 = vand.u32 2147483647, %v1894_v31 }
 0x4be   :  { %2404 = vst.msk [vmem:[%s4475_s4 + $0x88] sm:$0xff] %vm56_vm0, %v2175_v34  ;;  %v2179_v1 = vsub.f32 1.0, %v2178_v50  ;;  %vm2197_vm4 = vweird.f32 %v1894_v31 }
 0x4bf   :  { %v1746_v19 = vpop.f32.mrf.mxu0  ;;  %v2204_v22 = vor.u32 1.1754944e-38, %v2203_v44  ;;  %vm2202_vm6 = vcmp.eq.f32.partialorder %v2201_v35, 8.507059e+37 }
 0x4c0   :  { %v2180_v7 = vmul.f32 %v2998_v12, %v2179_v1  ;;  %v1747_v20 = vadd.f32 %v4270_v2, %v1746_v19 }
 0x4c2   :  { %v3000_v38 = vpop.eup %2999  ;;  %v2181_v9 = vadd.f32 %v2998_v12, %v2180_v7  ;;  %v2836_v13 = vmul.f32 -1.442695, %v1747_v20 }
 0x4c3   :  { %v3002_v26 = vpop.eup %3001  ;;  %v1895_v63 = vadd.f32 1.0, %v3000_v38 }
 0x4c4   :  { %v2185_v11 = vsel %vm2184_vm1, %v2998_v12, %v2181_v9  ;;  %v2193_v16 = vmul.f32 %v3002_v26, %v1894_v31  ;;  %3003 = vpow2.f32 %v2836_v13  ;;  %vm2198_vm3 = vweird.f32 %v3002_v26 }
 0x4c5   :  { %v2190_v43 = vsel %vm2187_vm2, %v2189_v30, %v2185_v11  ;;  %3005 = vrcp.f32 %v1895_v63  ;;  %vm2199_vm5 = vmor %vm2197_vm4, %vm2198_vm3  ;;  %v2218_v28 = vand.u32 2147483648, %v1895_v63  ;;  %v2216_v24 = vand.u32 2147483647, %v1895_v63 }
 0x4c6   :  { %2405 = vst.msk [vmem:[%s4475_s4 + $0x90] sm:$0xff] %vm56_vm0, %v2190_v43  ;;  %v2194_v39 = vsub.f32 1.0, %v2193_v16  ;;  %vm2212_vm8 = vweird.f32 %v1895_v63 }
 0x4c7   :  { %v1749_v45 = vpop.f32.mrf.mxu0  ;;  %v2219_v55 = vor.u32 1.1754944e-38, %v2218_v28  ;;  %vm2217_vm10 = vcmp.eq.f32.partialorder %v2216_v24, 8.507059e+37 }
 0x4c8   :  { %v2195_v27 = vmul.f32 %v3002_v26, %v2194_v39  ;;  %v1750_v58 = vadd.f32 %v4270_v2, %v1749_v45 }
 0x4ca   :  { %v3004_v49 = vpop.eup %3003  ;;  %v2196_v51 = vadd.f32 %v3002_v26, %v2195_v27  ;;  %v2837_v37 = vmul.f32 -1.442695, %v1750_v58 }
 0x4cb   :  { %v3006_v36 = vpop.eup %3005  ;;  %v1896_v62 = vadd.f32 1.0, %v3004_v49 }
 0x4cc   :  { %v2200_v56 = vsel %vm2199_vm5, %v3002_v26, %v2196_v51  ;;  %v2208_v29 = vmul.f32 %v3006_v36, %v1895_v63  ;;  %3007 = vpow2.f32 %v2837_v37  ;;  %vm2213_vm7 = vweird.f32 %v3006_v36 }
 0x4cd   :  { %v2205_v57 = vsel %vm2202_vm6, %v2204_v22, %v2200_v56  ;;  %3009 = vrcp.f32 %v1896_v62  ;;  %vm2214_vm9 = vmor %vm2212_vm8, %vm2213_vm7  ;;  %v2233_v32 = vand.u32 2147483648, %v1896_v62  ;;  %v2231_v48 = vand.u32 2147483647, %v1896_v62 }
 0x4ce   :  { %2406 = vst.msk [vmem:[%s4475_s4 + $0x98] sm:$0xff] %vm56_vm0, %v2205_v57  ;;  %v2209_v2 = vsub.f32 1.0, %v2208_v29  ;;  %vm2227_vm12 = vweird.f32 %v1896_v62 }
 0x4cf   :  { %v1752_v59 = vpop.f32.mrf.mxu0  ;;  %v2234_v4 = vor.u32 1.1754944e-38, %v2233_v32  ;;  %vm2232_vm14 = vcmp.eq.f32.partialorder %v2231_v48, 8.507059e+37 }
 0x4d0   :  { %v2210_v21 = vmul.f32 %v3006_v36, %v2209_v2  ;;  %v1753_v18 = vadd.f32 %v4410_v23, %v1752_v59 }
 0x4d2   :  { %v3008_v61 = vpop.eup %3007  ;;  %v2211_v33 = vadd.f32 %v3006_v36, %v2210_v21  ;;  %v2838_v47 = vmul.f32 -1.442695, %v1753_v18 }
 0x4d3   :  { %v3010_v6 = vpop.eup %3009  ;;  %v1897_v25 = vadd.f32 1.0, %v3008_v61 }
 0x4d4   :  { %v2215_v14 = vsel %vm2214_vm9, %v3006_v36, %v2211_v33  ;;  %v2223_v46 = vmul.f32 %v3010_v6, %v1896_v62  ;;  %3011 = vpow2.f32 %v2838_v47  ;;  %vm2228_vm11 = vweird.f32 %v3010_v6 }
 0x4d5   :  { %v2220_v0 = vsel %vm2217_vm10, %v2219_v55, %v2215_v14  ;;  %3013 = vrcp.f32 %v1897_v25  ;;  %vm2229_vm13 = vmor %vm2227_vm12, %vm2228_vm11  ;;  %v2248_v50 = vand.u32 2147483648, %v1897_v25  ;;  %v2246_v10 = vand.u32 2147483647, %v1897_v25 }
 0x4d6   :  { %2407 = vst.msk [vmem:[%s4475_s4 + $0xa0] sm:$0xff] %vm56_vm0, %v2220_v0  ;;  %v2224_v17 = vsub.f32 1.0, %v2223_v46  ;;  %vm2242_vm1 = vweird.f32 %v1897_v25 }
 0x4d7   :  { %v1755_v54 = vpop.f32.mrf.mxu0  ;;  %v2249_v9 = vor.u32 1.1754944e-38, %v2248_v50  ;;  %vm2247_vm3 = vcmp.eq.f32.partialorder %v2246_v10, 8.507059e+37 }
 0x4d8   :  { %v2225_v3 = vmul.f32 %v3010_v6, %v2224_v17  ;;  %v1756_v5 = vadd.f32 %v4410_v23, %v1755_v54 }
 0x4da   :  { %v3012_v52 = vpop.eup %3011  ;;  %v2226_v8 = vadd.f32 %v3010_v6, %v2225_v3  ;;  %v2839_v41 = vmul.f32 -1.442695, %v1756_v5 }
 0x4db   :  { %v3014_v60 = vpop.eup %3013  ;;  %v1898_v42 = vadd.f32 1.0, %v3012_v52 }
 0x4dc   :  { %v2230_v12 = vsel %vm2229_vm13, %v3010_v6, %v2226_v8  ;;  %v2238_v15 = vmul.f32 %v3014_v60, %v1897_v25  ;;  %3015 = vpow2.f32 %v2839_v41  ;;  %vm2243_vm15 = vweird.f32 %v3014_v60 }
 0x4dd   :  { %v2235_v31 = vsel %vm2232_vm14, %v2234_v4, %v2230_v12  ;;  %3017 = vrcp.f32 %v1898_v42  ;;  %vm2244_vm2 = vmor %vm2242_vm1, %vm2243_vm15  ;;  %v2263_v16 = vand.u32 2147483648, %v1898_v42  ;;  %v2261_v44 = vand.u32 2147483647, %v1898_v42 }
 0x4de   :  { %2408 = vst.msk [vmem:[%s4475_s4 + $0xa8] sm:$0xff] %vm56_vm0, %v2235_v31  ;;  %v2239_v53 = vsub.f32 1.0, %v2238_v15  ;;  %vm2257_vm5 = vweird.f32 %v1898_v42 }
 0x4df   :  { %v1758_v34 = vpop.f32.mrf.mxu0  ;;  %v2264_v51 = vor.u32 1.1754944e-38, %v2263_v16  ;;  %vm2262_vm7 = vcmp.eq.f32.partialorder %v2261_v44, 8.507059e+37 }
 0x4e0   :  { %v2240_v1 = vmul.f32 %v3014_v60, %v2239_v53  ;;  %v1759_v19 = vadd.f32 %v4410_v23, %v1758_v34 }
 0x4e2   :  { %v3016_v7 = vpop.eup %3015  ;;  %v2241_v40 = vadd.f32 %v3014_v60, %v2240_v1  ;;  %v2840_v20 = vmul.f32 -1.442695, %v1759_v19 }
 0x4e3   :  { %v3018_v38 = vpop.eup %3017  ;;  %v1899_v13 = vadd.f32 1.0, %v3016_v7 }
 0x4e4   :  { %v2245_v26 = vsel %vm2244_vm2, %v3014_v60, %v2241_v40  ;;  %v2253_v30 = vmul.f32 %v3018_v38, %v1898_v42  ;;  %3019 = vpow2.f32 %v2840_v20  ;;  %vm2258_vm4 = vweird.f32 %v3018_v38 }
 0x4e5   :  { %v2250_v63 = vsel %vm2247_vm3, %v2249_v9, %v2245_v26  ;;  %3021 = vrcp.f32 %v1899_v13  ;;  %vm2259_vm6 = vmor %vm2257_vm5, %vm2258_vm4  ;;  %v2278_v29 = vand.u32 2147483648, %v1899_v13  ;;  %v2276_v28 = vand.u32 2147483647, %v1899_v13 }
 0x4e6   :  { %2409 = vst.msk [vmem:[%s4475_s4 + $0xb0] sm:$0xff] %vm56_vm0, %v2250_v63  ;;  %v2254_v11 = vsub.f32 1.0, %v2253_v30  ;;  %vm2272_vm9 = vweird.f32 %v1899_v13 }
 0x4e7   :  { %v1761_v43 = vpop.f32.mrf.mxu0  ;;  %v2279_v33 = vor.u32 1.1754944e-38, %v2278_v29  ;;  %vm2277_vm11 = vcmp.eq.f32.partialorder %v2276_v28, 8.507059e+37 }
 0x4e8   :  { %v2255_v39 = vmul.f32 %v3018_v38, %v2254_v11  ;;  %v1762_v45 = vadd.f32 %v4410_v23, %v1761_v43 }
 0x4ea   :  { %v3020_v27 = vpop.eup %3019  ;;  %v2256_v35 = vadd.f32 %v3018_v38, %v2255_v39  ;;  %v2841_v58 = vmul.f32 -1.442695, %v1762_v45 }
 0x4eb   :  { %v3022_v49 = vpop.eup %3021  ;;  %v1900_v37 = vadd.f32 1.0, %v3020_v27 }
 0x4ec   :  { %v2260_v36 = vsel %vm2259_vm6, %v3018_v38, %v2256_v35  ;;  %v2268_v22 = vmul.f32 %v3022_v49, %v1899_v13  ;;  %3023 = vpow2.f32 %v2841_v58  ;;  %vm2273_vm8 = vweird.f32 %v3022_v49 }
 0x4ed   :  { %v2265_v62 = vsel %vm2262_vm7, %v2264_v51, %v2260_v36  ;;  %3025 = vrcp.f32 %v1900_v37  ;;  %vm2274_vm10 = vmor %vm2272_vm9, %vm2273_vm8  ;;  %v2293_v46 = vand.u32 2147483648, %v1900_v37  ;;  %v2291_v32 = vand.u32 2147483647, %v1900_v37 }
 0x4ee   :  { %2410 = vst.msk [vmem:[%s4475_s4 + $0xb8] sm:$0xff] %vm56_vm0, %v2265_v62  ;;  %v2269_v56 = vsub.f32 1.0, %v2268_v22  ;;  %vm2287_vm13 = vweird.f32 %v1900_v37 }
 0x4ef   :  { %v1764_v57 = vpop.f32.mrf.mxu0  ;;  %v2294_v8 = vor.u32 1.1754944e-38, %v2293_v46  ;;  %vm2292_vm15 = vcmp.eq.f32.partialorder %v2291_v32, 8.507059e+37 }
 0x4f0   :  { %v2270_v2 = vmul.f32 %v3022_v49, %v2269_v56  ;;  %v1765_v59 = vadd.f32 %v4410_v23, %v1764_v57 }
 0x4f2   :  { %v3024_v21 = vpop.eup %3023  ;;  %v2271_v24 = vadd.f32 %v3022_v49, %v2270_v2  ;;  %v2842_v18 = vmul.f32 -1.442695, %v1765_v59 }
 0x4f3   :  { %v3026_v61 = vpop.eup %3025  ;;  %v1901_v47 = vadd.f32 1.0, %v3024_v21 }
 0x4f4   :  { %v2275_v6 = vsel %vm2274_vm10, %v3022_v49, %v2271_v24  ;;  %v2283_v55 = vmul.f32 %v3026_v61, %v1900_v37  ;;  %3027 = vpow2.f32 %v2842_v18  ;;  %vm2288_vm12 = vweird.f32 %v3026_v61 }
 0x4f5   :  { %v2280_v25 = vsel %vm2277_vm11, %v2279_v33, %v2275_v6  ;;  %3029 = vrcp.f32 %v1901_v47  ;;  %vm2289_vm14 = vmor %vm2287_vm13, %vm2288_vm12  ;;  %v2308_v15 = vand.u32 2147483648, %v1901_v47  ;;  %v2306_v50 = vand.u32 2147483647, %v1901_v47 }
 0x4f6   :  { %2411 = vst.msk [vmem:[%s4475_s4 + $0xc0] sm:$0xff] %vm56_vm0, %v2280_v25  ;;  %v2284_v14 = vsub.f32 1.0, %v2283_v55  ;;  %vm2302_vm2 = vweird.f32 %v1901_v47 }
 0x4f7   :  { %v1767_v0 = vpop.f32.mrf.mxu0  ;;  %v2309_v40 = vor.u32 1.1754944e-38, %v2308_v15  ;;  %vm2307_vm4 = vcmp.eq.f32.partialorder %v2306_v50, 8.507059e+37 }
 0x4f8   :  { %v2285_v17 = vmul.f32 %v3026_v61, %v2284_v14  ;;  %v1768_v54 = vadd.f32 %v4410_v23, %v1767_v0 }
 0x4fa   :  { %v3028_v3 = vpop.eup %3027  ;;  %v2286_v48 = vadd.f32 %v3026_v61, %v2285_v17  ;;  %v2843_v5 = vmul.f32 -1.442695, %v1768_v54 }
 0x4fb   :  { %v3030_v52 = vpop.eup %3029  ;;  %v1902_v41 = vadd.f32 1.0, %v3028_v3 }
 0x4fc   :  { %v2290_v60 = vsel %vm2289_vm14, %v3026_v61, %v2286_v48  ;;  %v2298_v4 = vmul.f32 %v3030_v52, %v1901_v47  ;;  %3031 = vpow2.f32 %v2843_v5  ;;  %vm2303_vm1 = vweird.f32 %v3030_v52 }
 0x4fd   :  { %v2295_v42 = vsel %vm2292_vm15, %v2294_v8, %v2290_v60  ;;  %3033 = vrcp.f32 %v1902_v41  ;;  %vm2304_vm3 = vmor %vm2302_vm2, %vm2303_vm1  ;;  %v2323_v30 = vand.u32 2147483648, %v1902_v41  ;;  %v2321_v16 = vand.u32 2147483647, %v1902_v41 }
 0x4fe   :  { %2412 = vst.msk [vmem:[%s4475_s4 + $0xc8] sm:$0xff] %vm56_vm0, %v2295_v42  ;;  %v2299_v12 = vsub.f32 1.0, %v2298_v4  ;;  %vm2317_vm6 = vweird.f32 %v1902_v41 }
 0x4ff   :  { %v1770_v31 = vpop.f32.mrf.mxu0  ;;  %v2324_v35 = vor.u32 1.1754944e-38, %v2323_v30  ;;  %vm2322_vm8 = vcmp.eq.f32.partialorder %v2321_v16, 8.507059e+37 }
 0x500   :  { %v2300_v53 = vmul.f32 %v3030_v52, %v2299_v12  ;;  %v1771_v34 = vadd.f32 %v4410_v23, %v1770_v31 }
 0x502   :  { %v3032_v1 = vpop.eup %3031  ;;  %v2301_v10 = vadd.f32 %v3030_v52, %v2300_v53  ;;  %v2844_v19 = vmul.f32 -1.442695, %v1771_v34 }
 0x503   :  { %v3034_v7 = vpop.eup %3033  ;;  %v1903_v20 = vadd.f32 1.0, %v3032_v1 }
 0x504   :  { %v2305_v38 = vsel %vm2304_vm3, %v3030_v52, %v2301_v10  ;;  %v2313_v9 = vmul.f32 %v3034_v7, %v1902_v41  ;;  %3035 = vpow2.f32 %v2844_v19  ;;  %vm2318_vm5 = vweird.f32 %v3034_v7 }
 0x505   :  { %v2310_v13 = vsel %vm2307_vm4, %v2309_v40, %v2305_v38  ;;  %3037 = vrcp.f32 %v1903_v20  ;;  %vm2319_vm7 = vmor %vm2317_vm6, %vm2318_vm5  ;;  %v2338_v22 = vand.u32 2147483648, %v1903_v20  ;;  %v2336_v29 = vand.u32 2147483647, %v1903_v20 }
 0x506   :  { %2413 = vst.msk [vmem:[%s4475_s4 + $0xd0] sm:$0xff] %vm56_vm0, %v2310_v13  ;;  %v2314_v26 = vsub.f32 1.0, %v2313_v9  ;;  %vm2332_vm10 = vweird.f32 %v1903_v20 }
 0x507   :  { %v1773_v63 = vpop.f32.mrf.mxu0  ;;  %v2339_v24 = vor.u32 1.1754944e-38, %v2338_v22  ;;  %vm2337_vm12 = vcmp.eq.f32.partialorder %v2336_v29, 8.507059e+37 }
 0x508   :  { %v2315_v11 = vmul.f32 %v3034_v7, %v2314_v26  ;;  %v1774_v43 = vadd.f32 %v4410_v23, %v1773_v63 }
 0x50a   :  { %v3036_v39 = vpop.eup %3035  ;;  %v2316_v44 = vadd.f32 %v3034_v7, %v2315_v11  ;;  %v2845_v45 = vmul.f32 -1.442695, %v1774_v43 }
 0x50b   :  { %v3038_v27 = vpop.eup %3037  ;;  %v1904_v58 = vadd.f32 1.0, %v3036_v39 }
 0x50c   :  { %v2320_v49 = vsel %vm2319_vm7, %v3034_v7, %v2316_v44  ;;  %v2328_v51 = vmul.f32 %v3038_v27, %v1903_v20  ;;  %3039 = vpow2.f32 %v2845_v45  ;;  %vm2333_vm9 = vweird.f32 %v3038_v27 }
 0x50d   :  { %v2325_v37 = vsel %vm2322_vm8, %v2324_v35, %v2320_v49  ;;  %3041 = vrcp.f32 %v1904_v58  ;;  %vm2334_vm11 = vmor %vm2332_vm10, %vm2333_vm9  ;;  %v2353_v6 = vand.u32 2147483648, %v1904_v58  ;;  %v2351_v25 = vand.u32 2147483647, %v1904_v58 }
 0x50e   :  { %2414 = vst.msk [vmem:[%s4475_s4 + $0xd8] sm:$0xff] %vm56_vm0, %v2325_v37  ;;  %v2329_v36 = vsub.f32 1.0, %v2328_v51  ;;  %vm2347_vm14 = vweird.f32 %v1904_v58 }
 0x50f   :  { %v1776_v62 = vpop.f32.mrf.mxu0  ;;  %v2354_v17 = vor.u32 1.1754944e-38, %v2353_v6  ;;  %vm2352_vm1 = vcmp.eq.f32.partialorder %v2351_v25, 8.507059e+37 }
 0x510   :  { %v2330_v56 = vmul.f32 %v3038_v27, %v2329_v36  ;;  %v1777_v57 = vadd.f32 %v4410_v23, %v1776_v62 }
 0x512   :  { %v3040_v2 = vpop.eup %3039  ;;  %v2331_v28 = vadd.f32 %v3038_v27, %v2330_v56  ;;  %v2846_v59 = vmul.f32 -1.442695, %v1777_v57 }
 0x513   :  { %v3042_v21 = vpop.eup %3041  ;;  %v1905_v18 = vadd.f32 1.0, %v3040_v2 }
 0x514   :  { %v2335_v61 = vsel %vm2334_vm11, %v3038_v27, %v2331_v28  ;;  %v2343_v33 = vmul.f32 %v3042_v21, %v1904_v58  ;;  %3043 = vpow2.f32 %v2846_v59  ;;  %vm2348_vm13 = vweird.f32 %v3042_v21 }
 0x515   :  { %v2340_v47 = vsel %vm2337_vm12, %v2339_v24, %v2335_v61  ;;  %3045 = vrcp.f32 %v1905_v18  ;;  %vm2349_vm15 = vmor %vm2347_vm14, %vm2348_vm13  ;;  %v2368_v52 = vand.u32 2147483648, %v1905_v18  ;;  %v2366_v41 = vand.u32 2147483647, %v1905_v18 }
 0x516   :  { %2415 = vst.msk [vmem:[%s4475_s4 + $0xe0] sm:$0xff] %vm56_vm0, %v2340_v47  ;;  %v2344_v23 = vsub.f32 1.0, %v2343_v33  ;;  %vm2362_vm3 = vweird.f32 %v1905_v18 }
 0x517   :  { %v2369_v42 = vor.u32 1.1754944e-38, %v2368_v52  ;;  %vm2367_vm5 = vcmp.eq.f32.partialorder %v2366_v41, 8.507059e+37 }
 0x518   :  { %v2345_v55 = vmul.f32 %v3042_v21, %v2344_v23 }
 0x51a   :  { %v3044_v14 = vpop.eup %3043  ;;  %v2346_v46 = vadd.f32 %v3042_v21, %v2345_v55 }
 0x51b   :  { %v3046_v0 = vpop.eup %3045  ;;  %v1906_v32 = vadd.f32 1.0, %v3044_v14 }
 0x51c   :  { %v2350_v54 = vsel %vm2349_vm15, %v3042_v21, %v2346_v46  ;;  %v2358_v3 = vmul.f32 %v3046_v0, %v1905_v18  ;;  %vm2363_vm2 = vweird.f32 %v3046_v0 }
 0x51d   :  { %v2355_v48 = vsel %vm2352_vm1, %v2354_v17, %v2350_v54  ;;  %3047 = vrcp.f32 %v1906_v32  ;;  %vm2364_vm4 = vmor %vm2362_vm3, %vm2363_vm2  ;;  %v2383_v50 = vand.u32 2147483648, %v1906_v32  ;;  %v2381_v1 = vand.u32 2147483647, %v1906_v32 }
 0x51e   :  { %2416 = vst.msk [vmem:[%s4475_s4 + $0xe8] sm:$0xff] %vm56_vm0, %v2355_v48  ;;  %v2359_v5 = vsub.f32 1.0, %v2358_v3  ;;  %vm2377_vm7 = vweird.f32 %v1906_v32 }
 0x51f   :  { %v2384_v19 = vor.u32 1.1754944e-38, %v2383_v50  ;;  %vm2382_vm9 = vcmp.eq.f32.partialorder %v2381_v1, 8.507059e+37 }
 0x520   :  { %v2360_v8 = vmul.f32 %v3046_v0, %v2359_v5 }
 0x522   :  { %v2361_v60 = vadd.f32 %v3046_v0, %v2360_v8 }
 0x523   :  { %v3048_v4 = vpop.eup %3047 }
 0x524   :  { %v2365_v12 = vsel %vm2364_vm4, %v3046_v0, %v2361_v60  ;;  %v2373_v15 = vmul.f32 %v3048_v4, %v1906_v32  ;;  %vm2378_vm6 = vweird.f32 %v3048_v4 }
 0x525   :  { %v2370_v31 = vsel %vm2367_vm5, %v2369_v42, %v2365_v12  ;;  %vm2379_vm8 = vmor %vm2377_vm7, %vm2378_vm6 }
 0x526   :  { %2417 = vst.msk [vmem:[%s4475_s4 + $0xf0] sm:$0xff] %vm56_vm0, %v2370_v31  ;;  %v2374_v53 = vsub.f32 1.0, %v2373_v15 }
 0x528   :  { %v2375_v34 = vmul.f32 %v3048_v4, %v2374_v53 }
 0x52a   :  { %v2376_v10 = vadd.f32 %v3048_v4, %v2375_v34 }
 0x52c   :  { %v2380_v7 = vsel %vm2379_vm8, %v3048_v4, %v2376_v10 }
 0x52d   :  { %v2385_v40 = vsel %vm2382_vm9, %v2384_v19, %v2380_v7 }
 0x52e   :  { %2418 = vst.msk [vmem:[%s4475_s4 + $0xf8] sm:$0xff] %vm56_vm0, %v2385_v40 }

</bundles_post_ra>
